<compile_context>
chip_gen: v5e
topology: v5e:2x2
jax: 0.10.0
libtpu: 0.0.40
codegen_flags: <defaults>
</compile_context>

<pallas_src>
import functools

import jax
import jax.numpy as jnp
from jax.experimental import pallas as pl
from jax.experimental.pallas import tpu as pltpu


def _round_up(x, m):
    return ((x + m - 1) // m) * m


def _vmem_limit(need_bytes):
    # Explicit scoped-VMEM budget (v5e default is only 16 MiB); comfortably above the
    # actual double-buffered working set, capped under every generation's capacity.
    return int(min(max(int(need_bytes) + (8 << 20), 32 << 20), 96 << 20))


# ----------------------------------------------------------------------------
# Kernel 1: stream the queue ONCE; resident partition rows; running top-1
# (score, global queue index) per partition slot.
# ----------------------------------------------------------------------------
def _sim_top1_kernel(p_ref, q_ref, bias_ref, score_ref, idx_ref, *,
                     tile_m, tile_p, n_psub):
    ki = pl.program_id(0)

    @pl.when(ki == 0)
    def _init():
        score_ref[...] = jnp.full_like(score_ref, -jnp.inf)
        idx_ref[...] = jnp.zeros_like(idx_ref)

    q = q_ref[...]                                  # (tile_m, D) bf16, streamed
    bias = bias_ref[...]                            # (tile_m, 1) bf16: 0 or -inf
    base = ki * tile_m                              # global queue-row offset of this tile

    # Static inner loop over partition sub-tiles: the queue tile (the only per-step
    # HBM traffic) is reused for every sub-tile -> queue read from HBM exactly once.
    for sub in range(n_psub):
        lo = sub * tile_p
        p_blk = p_ref[lo:lo + tile_p, :]            # (tile_p, D) bf16, VMEM-resident
        # sims[m, p] = <queue_row[m], partition_row[p]>  (contract D), f32 MXU acc.
        sims = jax.lax.dot_general(
            q, p_blk, dimension_numbers=(((1,), (1,)), ((), ())),
            preferred_element_type=jnp.float32)     # (tile_m, tile_p)
        sims = sims + bias                          # -inf on partition / padded slots

        tile_max = jnp.max(sims, axis=0, keepdims=True)                  # (1, tile_p)
        # TODO(synk): fuse into a single variadic argmax reduce if/when that lowers.
        row = jax.lax.broadcasted_iota(jnp.int32, sims.shape, 0)
        tile_arg = jnp.min(jnp.where(sims == tile_max, row, tile_m),
                           axis=0, keepdims=True) + base                 # (1, tile_p)

        cur_m = score_ref[:, lo:lo + tile_p]
        cur_i = idx_ref[:, lo:lo + tile_p]
        better = tile_max > cur_m
        score_ref[:, lo:lo + tile_p] = jnp.where(better, tile_max, cur_m)
        idx_ref[:, lo:lo + tile_p] = jnp.where(better, tile_arg, cur_i)


def similarity_top1(partition_rows, queue_padded, bias_padded, *, tile_m=512, tile_p=512):
    """partition_rows: (P, D) bf16; queue_padded: (K_pad, D) bf16 with K_pad % tile_m == 0;
    bias_padded: (K_pad, 1) additive mask (-inf on partition slots and padded tail rows).

    Returns (scores (P,) f32, global queue-row indices (P,) i32) of the best
    memory-block neighbor for each partition slot.
    """
    P, D = partition_rows.shape
    K_pad, _ = queue_padded.shape
    tile_m = min(tile_m, K_pad)
    assert K_pad % tile_m == 0, (K_pad, tile_m)

    P_pad = _round_up(P, 128)                       # lane-dense accumulators / outputs
    if P_pad <= tile_p:
        tile_p = P_pad
    else:
        P_pad = _round_up(P, tile_p)

    p = jnp.pad(partition_rows, ((0, P_pad - P), (0, 0)))

    n_kt = K_pad // tile_m
    n_psub = P_pad // tile_p

    vmem_need = (2 * P_pad * D * 2              # resident partition rows (double-buffered)
                 + 2 * tile_m * D * 2           # streamed queue tile (double-buffered bf16)
                 + 2 * tile_m * 128 * 2         # bias tile, lane-padded to 128, bf16
                 + 2 * 2 * 8 * P_pad * 4        # (1, P_pad) f32/i32 outputs, sublane-padded
                 + 4 * tile_m * tile_p * 4)     # in-kernel sims / iota / where temporaries

    kern = functools.partial(_sim_top1_kernel, tile_m=tile_m, tile_p=tile_p, n_psub=n_psub)

    scores, idxs = pl.pallas_call(
        kern,
        out_shape=(jax.ShapeDtypeStruct((1, P_pad), jnp.float32),
                   jax.ShapeDtypeStruct((1, P_pad), jnp.int32)),
        grid_spec=pltpu.PrefetchScalarGridSpec(
            num_scalar_prefetch=0,
            grid=(n_kt,),
            in_specs=[
                pl.BlockSpec((P_pad, D), lambda ki: (0, 0)),    # resident partition rows
                pl.BlockSpec((tile_m, D), lambda ki: (ki, 0)),  # streamed queue tile
                pl.BlockSpec((tile_m, 1), lambda ki: (ki, 0)),  # streamed -inf mask
            ],
            out_specs=[
                pl.BlockSpec((1, P_pad), lambda ki: (0, 0)),
                pl.BlockSpec((1, P_pad), lambda ki: (0, 0)),
            ]),
        compiler_params=pltpu.CompilerParams(
            dimension_semantics=("arbitrary",),
            vmem_limit_bytes=_vmem_limit(vmem_need)),
    )(p, queue_padded, bias_padded)

    return scores.reshape(P_pad)[:P], idxs.reshape(P_pad)[:P]


# ----------------------------------------------------------------------------
# Kernel 2: fused student+teacher head:  softmax(E @ pne.T / temp) @ plm
# with plm tiled along the label axis and cached softmax probs in VMEM scratch.
# ----------------------------------------------------------------------------
def _fused_head_kernel(es_ref, et_ref, pne_ref, plm_ref, so_ref, to_ref,
                       sprob_ref, tprob_ref, *, inv_temp_s, inv_temp_t, n_valid):
    psi = pl.program_id(1)

    # Compute the two softmax prob tiles once per batch tile; ps tiles reuse them.
    @pl.when(psi == 0)
    def _probs():
        pne = pne_ref[...]                                     # (n_pad, D) bf16
        col_ok = jax.lax.broadcasted_iota(jnp.int32, (1, pne.shape[0]), 1) < n_valid
        neg = jnp.float32(-1e30)

        def one_head(emb, inv_t, prob_ref):
            logits = jax.lax.dot_general(
                emb, pne, dimension_numbers=(((1,), (1,)), ((), ())),
                preferred_element_type=jnp.float32) * inv_t    # (tile_b, n_pad)
            logits = jnp.where(col_ok, logits, neg)            # kill zero-padded columns
            mx = jnp.max(logits, axis=-1, keepdims=True)
            e = jnp.exp(logits - mx)
            inv_den = pl.reciprocal(jnp.sum(e, axis=-1, keepdims=True), approx=False)
            prob_ref[...] = (e * inv_den).astype(jnp.bfloat16)

        one_head(es_ref[...], inv_temp_s, sprob_ref)
        one_head(et_ref[...], inv_temp_t, tprob_ref)

    plm = plm_ref[...]                                         # (n_pad, tile_ps) bf16
    so_ref[...] = jnp.dot(sprob_ref[...], plm, preferred_element_type=jnp.float32)
    to_ref[...] = jnp.dot(tprob_ref[...], plm, preferred_element_type=jnp.float32)


def fused_heads(emb_s, emb_t, pne_rows, plm, temp_s, temp_t, *, tile_b=128, tile_ps=512):
    """emb_*: (B, D), pne_rows: (n, D), plm: (n, psize) -> two (B, psize) f32 outputs."""
    B, D = emb_s.shape
    n, psize = plm.shape

    tile_b = min(tile_b, _round_up(B, 8))
    B_pad = _round_up(B, tile_b)
    n_pad = _round_up(n, 128)
    ps_pad = _round_up(psize, 128)
    if ps_pad <= tile_ps:
        tile_ps = ps_pad
    else:
        ps_pad = _round_up(psize, tile_ps)

    es = jnp.pad(emb_s.astype(jnp.bfloat16), ((0, B_pad - B), (0, 0)))
    et = jnp.pad(emb_t.astype(jnp.bfloat16), ((0, B_pad - B), (0, 0)))
    pne = jnp.pad(pne_rows.astype(jnp.bfloat16), ((0, n_pad - n), (0, 0)))
    # NOTE: plm is cast to bf16 as an MXU operand (label targets tolerate bf16).
    plm_p = jnp.pad(plm, ((0, n_pad - n), (0, ps_pad - psize))).astype(jnp.bfloat16)

    n_bt = B_pad // tile_b
    n_pst = ps_pad // tile_ps

    vmem_need = (2 * 2 * tile_b * D * 2          # es/et (double-buffered bf16)
                 + 2 * n_pad * D * 2             # resident pne (double-buffered, DMA'd once)
                 + 2 * n_pad * tile_ps * 2       # plm tile (double-buffered bf16)
                 + 2 * 2 * tile_b * tile_ps * 4  # two f32 output tiles, double-buffered
                 + 2 * tile_b * n_pad * 2        # bf16 prob scratch x2 heads
                 + 3 * tile_b * n_pad * 4)       # f32 logits / exp temporaries

    kern = functools.partial(_fused_head_kernel,
                             inv_temp_s=float(1.0 / temp_s),
                             inv_temp_t=float(1.0 / temp_t),
                             n_valid=n)

    s_out, t_out = pl.pallas_call(
        kern,
        out_shape=(jax.ShapeDtypeStruct((B_pad, ps_pad), jnp.float32),
                   jax.ShapeDtypeStruct((B_pad, ps_pad), jnp.float32)),
        grid_spec=pltpu.PrefetchScalarGridSpec(
            num_scalar_prefetch=0,
            grid=(n_bt, n_pst),
            in_specs=[
                pl.BlockSpec((tile_b, D), lambda bi, pi: (bi, 0)),
                pl.BlockSpec((tile_b, D), lambda bi, pi: (bi, 0)),
                pl.BlockSpec((n_pad, D), lambda bi, pi: (0, 0)),     # resident pne
                pl.BlockSpec((n_pad, tile_ps), lambda bi, pi: (0, pi)),
            ],
            out_specs=[
                pl.BlockSpec((tile_b, tile_ps), lambda bi, pi: (bi, pi)),
                pl.BlockSpec((tile_b, tile_ps), lambda bi, pi: (bi, pi)),
            ],
            scratch_shapes=[pltpu.VMEM((tile_b, n_pad), jnp.bfloat16),
                            pltpu.VMEM((tile_b, n_pad), jnp.bfloat16)]),
        compiler_params=pltpu.CompilerParams(
            dimension_semantics=("parallel", "arbitrary"),
            vmem_limit_bytes=_vmem_limit(vmem_need)),
    )(es, et, pne, plm_p)

    return s_out[:B, :psize], t_out[:B, :psize]


# ----------------------------------------------------------------------------
# MemoryBank module (JAX / Pallas)
# ----------------------------------------------------------------------------
class MemoryBank:
    QUEUE_TILE = 512  # kernel-1 queue-tile rows; the queue buffer is pre-padded to a multiple

    def __init__(self, K, partition_size, num_experts_per_concept=2, out_dim=256,
                 smoothing=0.1, num_tasks=1, selection_strategy="low_energy",
                 init_key=None):
        assert num_experts_per_concept == 2, \
            "kernel implements top-k with k = num_experts_per_concept - 1 = 1"
        # TODO(synk): generalize the fused top-k reduction to k > 1 (num_experts_per_concept > 2).
        self.K = K
        self.partition_size = partition_size
        self.num_experts_per_concept = num_experts_per_concept
        self.out_dim = out_dim
        self.smoothing = smoothing
        self.num_tasks = num_tasks
        self.selection_strategy = selection_strategy

        if init_key is None:
            init_key = jax.random.PRNGKey(0)

        # Row-major (K, out_dim) queue, rows normalized (== torch normalize(dim=0) on (D, K)),
        # stored PRE-PADDED to a multiple of QUEUE_TILE so kernel 1 never pads per call.
        self.K_pad = _round_up(K, self.QUEUE_TILE)
        q = jax.random.normal(init_key, (K, out_dim), dtype=jnp.float32)
        q = q / jnp.linalg.norm(q, axis=1, keepdims=True)
        self.queue = jnp.zeros((self.K_pad, out_dim), dtype=jnp.bfloat16).at[:K].set(
            q.astype(jnp.bfloat16))

        # Persistent additive mask: 0 for real slots, -inf for the padded tail.  Per forward
        # only the P partition slots are scattered to -inf (no O(K*D) pad / O(K) where).
        base_bias = jnp.where(jnp.arange(self.K_pad) < K, 0.0, -jnp.inf)
        self._base_bias = base_bias.reshape(self.K_pad, 1).astype(jnp.bfloat16)

        self.queue_ptr = jnp.zeros((1,), dtype=jnp.int32)
        self.partition_labels = jnp.repeat(
            jnp.arange(partition_size, dtype=jnp.int32), num_experts_per_concept)

    def get_features(self):
        return self.queue[: self.K]              # logical (K, out_dim) bf16 view

    def forward(self, student_embeds, teacher_embeds, student_temp, teacher_temp, key):
        queue = self.queue                       # (K_pad, D) bf16, rows >= K are zero
        K = self.K
        P = self.partition_size
        M = K - P
        student_out, teacher_out = [], []

        for _ in range(self.num_tasks):
            key, k_perm, k_sel = jax.random.split(key, 3)

            # Random partition / memory-block split of the queue slots.
            perm = jax.random.permutation(k_perm, K)
            partition_indices = perm[:P].astype(jnp.int32)             # (P,)
            partition_rows = queue[partition_indices]                  # (P, D) bf16
            bias = self._base_bias.at[partition_indices, 0].set(-jnp.inf)   # (K_pad, 1)

            # --- Pallas kernel 1: queue streamed once, fused top-1 neighbor ---
            neigh_scores, neigh_qidx = similarity_top1(partition_rows, queue, bias)

            # indices_/scores_ pairs: (best memory-block neighbor, the slot itself)
            pair_qidx = jnp.stack([neigh_qidx, partition_indices], axis=1)        # (P, 2)
            pair_scores = jnp.stack(
                [neigh_scores,
                 jnp.full((P,), 1.0 - self.smoothing, jnp.float32)], axis=1)      # (P, 2)

            psize = self.partition_size
            if self.selection_strategy == "low_energy" and self.num_experts_per_concept > 1:
                psize = self.partition_size // 2
                sample_means = jnp.abs(neigh_scores)          # mean over k=1 neighbors
                sample_stds = neigh_scores                    # (matches torch reference)
                coef_variation = sample_stds / (sample_means + 1e-8)
                coef_variation = (1.0 + 1.0 / (4.0 * M)) * coef_variation
                sample_weights = 1.0 / coef_variation
                # torch.multinomial(w, psize, replacement=False) == Gumbel-top-k over log w.
                w = jnp.maximum(sample_weights, 1e-20)
                g = jax.random.gumbel(k_sel, w.shape)
                sel = jnp.argsort(-(jnp.log(w) + g))[:psize]
                pair_qidx = pair_qidx[sel]                                        # (psize, 2)
                pair_scores = pair_scores[sel]

            flat_qidx = pair_qidx.reshape(-1)                                     # (n,)
            flat_scores = pair_scores.reshape(-1)                                 # (n,)
            n = flat_qidx.shape[0]
            pne_rows = queue[flat_qidx]                                           # (n, D) bf16

            labels = self.partition_labels[:n]                                    # (n,)
            smooth_value = (1.0 - flat_scores)[:, None] / (psize - 1)
            plm = jnp.ones((n, psize), dtype=jnp.float32) * smooth_value
            plm = plm.at[jnp.arange(n), labels].set(flat_scores)                  # scatter_
            plm = plm / jnp.sum(plm, axis=-1, keepdims=True)

            # --- Pallas kernel 2: fused student+teacher logits->softmax->label matmul ---
            s_probs, t_probs = fused_heads(student_embeds, teacher_embeds,
                                           pne_rows, plm, student_temp, teacher_temp)
            student_out.append(s_probs)
            teacher_out.append(t_probs)

        return student_out, teacher_out


# ----------------------------------------------------------------------------
if __name__ == "__main__":
    key = jax.random.PRNGKey(0)
    k_init, k_s, k_t, k_fwd = jax.random.split(key, 4)

    # small shapes: out_dim=32, K=64, partition_size=16, batch=8
    out_dim, K, partition_size, batch = 32, 64, 16, 8

    bank = MemoryBank(K=K, partition_size=partition_size,
                      num_experts_per_concept=2, out_dim=out_dim,
                      smoothing=0.1, num_tasks=1,
                      selection_strategy="low_energy", init_key=k_init)

    student_embeds = jax.random.normal(k_s, (batch, out_dim), dtype=jnp.float32)
    teacher_embeds = jax.random.normal(k_t, (batch, out_dim), dtype=jnp.float32)

    s_probs, t_probs = bank.forward(student_embeds, teacher_embeds,
                                    student_temp=0.1, teacher_temp=0.07, key=k_fwd)
    jax.block_until_ready(s_probs)
    jax.block_until_ready(t_probs)

    assert s_probs[0].shape == (batch, partition_size // 2)
    assert t_probs[0].shape == (batch, partition_size // 2)
    assert bool(jnp.all(jnp.isfinite(s_probs[0]))) and bool(jnp.all(jnp.isfinite(t_probs[0])))
    print("KERNEL_OK")
</pallas_src>

<mosaic_0001>
module attributes {stable_mosaic.version = 11 : i64} {
  func.func @_sim_top1_kernel(%arg0: i32, %arg1: memref<128x32xbf16, #tpu.memory_space<vmem>>, %arg2: memref<512x32xbf16, #tpu.memory_space<vmem>>, %arg3: memref<512x1xbf16, #tpu.memory_space<vmem>>, %arg4: memref<1x128xf32, #tpu.memory_space<vmem>>, %arg5: memref<1x128xi32, #tpu.memory_space<vmem>>) attributes {dimension_semantics = [#tpu.dimension_semantics<arbitrary>], iteration_bounds = array<i64: 1>, scalar_prefetch = 0 : i64, scratch_operands = 0 : i64, tpu.core_type = #tpu.core_type<tc>, window_params = [{pipeline_mode = #tpu.pipeline_mode<synchronous>, transform_indices = @transform_0, window_bounds = array<i64: 128, 32>}, {transform_indices = @transform_1, window_bounds = array<i64: 512, 32>}, {transform_indices = @transform_2, window_bounds = array<i64: 512, 1>}, {pipeline_mode = #tpu.pipeline_mode<synchronous>, transform_indices = @transform_3, window_bounds = array<i64: 1, 128>}, {pipeline_mode = #tpu.pipeline_mode<synchronous>, transform_indices = @transform_4, window_bounds = array<i64: 1, 128>}]} {
    %c0_i32 = arith.constant 0 : i32
    %0 = arith.cmpi eq, %arg0, %c0_i32 : i32
    %1 = arith.extui %0 : i1 to i32
    %c0_i32_0 = arith.constant 0 : i32
    %2 = arith.cmpi ne, %1, %c0_i32_0 : i32
    scf.if %2 {
      %cst_17 = arith.constant 0xFF800000 : f32
      %29 = vector.broadcast %cst_17 : f32 to vector<1x128xf32>
      %c0_18 = arith.constant 0 : index
      %c0_19 = arith.constant 0 : index
      %30 = vector.load %arg4[%c0_18, %c0_19] : memref<1x128xf32, #tpu.memory_space<vmem>>, vector<1x128xf32>
      tpu.vector_store %arg4[%c0_18, %c0_19], %29 {strides = array<i32>} : memref<1x128xf32, #tpu.memory_space<vmem>>, vector<1x128xf32>,
      %c0_i32_20 = arith.constant 0 : i32
      %31 = vector.broadcast %c0_i32_20 : i32 to vector<1x128xi32>
      %c0_21 = arith.constant 0 : index
      %c0_22 = arith.constant 0 : index
      %32 = vector.load %arg5[%c0_21, %c0_22] : memref<1x128xi32, #tpu.memory_space<vmem>>, vector<1x128xi32>
      tpu.vector_store %arg5[%c0_21, %c0_22], %31 {strides = array<i32>} : memref<1x128xi32, #tpu.memory_space<vmem>>, vector<1x128xi32>,
    } else {
    }
    %c0 = arith.constant 0 : index
    %c0_1 = arith.constant 0 : index
    %3 = vector.load %arg2[%c0, %c0_1] : memref<512x32xbf16, #tpu.memory_space<vmem>>, vector<512x32xbf16>
    %c0_2 = arith.constant 0 : index
    %c0_3 = arith.constant 0 : index
    %4 = vector.load %arg3[%c0_2, %c0_3] : memref<512x1xbf16, #tpu.memory_space<vmem>>, vector<512x1xbf16>
    %c512_i32 = arith.constant 512 : i32
    %5 = arith.muli %arg0, %c512_i32 : i32
    %c0_4 = arith.constant 0 : index
    %c0_5 = arith.constant 0 : index
    %6 = vector.load %arg1[%c0_4, %c0_5] : memref<128x32xbf16, #tpu.memory_space<vmem>>, vector<128x32xbf16>
    %cst = arith.constant dense<0.000000e+00> : vector<512x128xf32>
    %7 = tpu.matmul %3, %6, %cst {dimension_numbers = #tpu.dot_dimension_numbers<[1], [1], [0], [0], [0, 0, 1, 0], [], []>} : vector<512x32xbf16>, vector<128x32xbf16>, vector<512x128xf32> -> vector<512x128xf32>
    %8 = arith.extf %4 : vector<512x1xbf16> to vector<512x1xf32>
    %9 = vector.broadcast %8 : vector<512x1xf32> to vector<512x128xf32>
    %10 = arith.addf %7, %9 : vector<512x128xf32>
    %cst_6 = arith.constant dense<0xFF800000> : vector<128xf32>
    %11 = vector.multi_reduction <maximumf>, %10, %cst_6 [0] : vector<512x128xf32> to vector<128xf32>
    %12 = vector.shape_cast %11 : vector<128xf32> to vector<1x128xf32>
    %13 = tpu.iota {dimensions = array<i32: 0>} : vector<512x128xi32>
    %14 = vector.broadcast %12 : vector<1x128xf32> to vector<512x128xf32>
    %15 = arith.cmpf oeq, %10, %14 : vector<512x128xf32>
    %c512_i32_7 = arith.constant 512 : i32
    %16 = vector.broadcast %c512_i32_7 : i32 to vector<512x128xi32>
    %17 = arith.select %15, %13, %16 : vector<512x128xi1>, vector<512x128xi32>
    %cst_8 = arith.constant dense<2147483647> : vector<128xi32>
    %18 = vector.multi_reduction <minsi>, %17, %cst_8 [0] : vector<512x128xi32> to vector<128xi32>
    %19 = vector.shape_cast %18 : vector<128xi32> to vector<1x128xi32>
    %20 = vector.broadcast %5 : i32 to vector<1x128xi32>
    %21 = arith.addi %19, %20 : vector<1x128xi32>
    %c0_9 = arith.constant 0 : index
    %c0_10 = arith.constant 0 : index
    %22 = vector.load %arg4[%c0_9, %c0_10] : memref<1x128xf32, #tpu.memory_space<vmem>>, vector<1x128xf32>
    %c0_11 = arith.constant 0 : index
    %c0_12 = arith.constant 0 : index
    %23 = vector.load %arg5[%c0_11, %c0_12] : memref<1x128xi32, #tpu.memory_space<vmem>>, vector<1x128xi32>
    %24 = arith.cmpf ogt, %12, %22 : vector<1x128xf32>
    %25 = arith.select %24, %12, %22 : vector<1x128xi1>, vector<1x128xf32>
    %c0_13 = arith.constant 0 : index
    %c0_14 = arith.constant 0 : index
    %26 = vector.load %arg4[%c0_13, %c0_14] : memref<1x128xf32, #tpu.memory_space<vmem>>, vector<1x128xf32>
    tpu.vector_store %arg4[%c0_13, %c0_14], %25 {strides = array<i32>} : memref<1x128xf32, #tpu.memory_space<vmem>>, vector<1x128xf32>,
    %27 = arith.select %24, %21, %23 : vector<1x128xi1>, vector<1x128xi32>
    %c0_15 = arith.constant 0 : index
    %c0_16 = arith.constant 0 : index
    %28 = vector.load %arg5[%c0_15, %c0_16] : memref<1x128xi32, #tpu.memory_space<vmem>>, vector<1x128xi32>
    tpu.vector_store %arg5[%c0_15, %c0_16], %27 {strides = array<i32>} : memref<1x128xi32, #tpu.memory_space<vmem>>, vector<1x128xi32>,
    return
  }
  func.func @transform_0(%arg0: i32) -> (i32, i32) {
    %c0_i32 = arith.constant 0 : i32
    %c0_i32_0 = arith.constant 0 : i32
    %c0_i32_1 = arith.constant 0 : i32
    return %c0_i32, %c0_i32_0 : i32, i32
  }
  func.func @transform_1(%arg0: i32) -> (i32, i32) {
    %c0_i32 = arith.constant 0 : i32
    %c0_i32_0 = arith.constant 0 : i32
    return %arg0, %c0_i32 : i32, i32
  }
  func.func @transform_2(%arg0: i32) -> (i32, i32) {
    %c0_i32 = arith.constant 0 : i32
    %c0_i32_0 = arith.constant 0 : i32
    return %arg0, %c0_i32 : i32, i32
  }
  func.func @transform_3(%arg0: i32) -> (i32, i32) {
    %c0_i32 = arith.constant 0 : i32
    %c0_i32_0 = arith.constant 0 : i32
    %c0_i32_1 = arith.constant 0 : i32
    return %c0_i32, %c0_i32_0 : i32, i32
  }
  func.func @transform_4(%arg0: i32) -> (i32, i32) {
    %c0_i32 = arith.constant 0 : i32
    %c0_i32_0 = arith.constant 0 : i32
    %c0_i32_1 = arith.constant 0 : i32
    return %c0_i32, %c0_i32_0 : i32, i32
  }
}

</mosaic_0001>

<bundles_post_ra>
// kernel: tpu_custom_call.1
= control target key start
LH: loop header
LB: loop body
LE: loop exit
PB: predicated region body
PF: predicated region fallthrough
CT: control target
= control target key end

     0   :  { %10 = vsyncpa [#allocation3], 0  ;;  %vm753_vm0 = vcmask 261120   ;;  %v2115_v1 = vmov 0   ;;  %s3517_s0 = inlined_call_operand.vmem [shape: bf16[128,32], index: 0, kind: input, shape index: {}]   ;;  %s3518_s1 = inlined_call_operand.vmem [shape: bf16[512,32], index: 1, kind: input, shape index: {}]   ;;  %s3519_s2 = inlined_call_operand.vmem [shape: bf16[512,1], index: 2, kind: input, shape index: {}]   ;;  %s3520_s3 = inlined_call_operand.hbm [shape: f32[1,128], index: 3, kind: output, shape index: {0}]   ;;  %s3521_s4 = inlined_call_operand.hbm [shape: s32[1,128], index: 4, kind: output, shape index: {1}]  }
   0x1   :  { %v1712_v0 = vld [vmem:[%s3517_s0 + $0x38] sm:$0xff]  ;;  %1900 = vset.pattern.permute.xlu0 %v2115_v1  ;;  %23 = vst [vmem:[#allocation4] sm:$0x1] %v2115_v1  ;;  %v1714_v2 = vld [vmem:[%s3519_s2] sm:$0xff]   ;;  %1911 = vset.pattern.permute.xlu1 %v2115_v1  ;;  %v1842_v5 = vld [vmem:[%s3519_s2 + $0x10] sm:$0xff]  }
   0x2   :  { %v872_v3 = vsel %vm753_vm0, %v1712_v0, 0  ;;  %v1715_v4 = vunpack.c.l.bf16 %v1714_v2  ;;  %1922 = vset.pattern.permute.xlu2 %v2115_v1  ;;  %v1716_v6 = vunpack.c.h.bf16 %v1714_v2  ;;  %v1711_v7 = vld [vmem:[%s3517_s0 + $0x30] sm:$0xff]  ;;  %v1841_v8 = vld [vmem:[%s3519_s2 + $0x8] sm:$0xff]   ;;  %v1723_v9 = vunpack.c.l.bf16 %v1842_v5  ;;  %v1843_v12 = vld [vmem:[%s3519_s2 + $0x18] sm:$0xff]  }
   0x3   :  { %874 = vmatpush.bf16.xpose.msra.mxu0 %v872_v3  ;;  %1872 = vmatpush.bf16.xpose.msra.mxu1 %v872_v3  ;;  %v1724_v10 = vunpack.c.h.bf16 %v1842_v5 }
   0x4   :  { %1873 = vmatpush.bf16.xpose.msra.mxu2 %v872_v3  ;;  %1874 = vmatpush.bf16.xpose.msra.mxu3 %v872_v3  ;;  %v1901_v11 = vpack.i.bf16 %v1716_v6, %v1715_v4 }
   0x5   :  { %v1912_v13 = vpack.i.bf16 %v1724_v10, %v1723_v9 }
   0x6   :  { %11 = vsyncpa [#allocation5], 0  ;;  %1902 = vperm.xlu0 %1900, %v1901_v11   ;;  %v1719_v14 = vunpack.c.l.bf16 %v1841_v8  ;;  %v1720_v15 = vunpack.c.h.bf16 %v1841_v8  ;;  %v1844_v16 = vld [vmem:[%s3519_s2 + $0x20] sm:$0xff]   ;;  %v869_v17 = vsel %vm753_vm0, %v1711_v7, 0  ;;  %v1727_v18 = vunpack.c.l.bf16 %v1843_v12  ;;  %v1845_v23 = vld [vmem:[%s3519_s2 + $0x28] sm:$0xff]   ;;  %s1456_s26 = sshll.u32 %s3520_s3, 4  ;;  %s1457_s26 = int_to_ptr.hbm [resolvable:$true] %s1456_s26 }
   0x7   :  { %1913 = vperm.xlu1 %1911, %v1912_v13   ;;  %v1728_v19 = vunpack.c.h.bf16 %v1843_v12  ;;  %v1731_v20 = vunpack.c.l.bf16 %v1844_v16  ;;  %v1732_v21 = vunpack.c.h.bf16 %v1844_v16  ;;  %v1710_v24 = vld [vmem:[%s3517_s0 + $0x28] sm:$0xff]  ;;  %v1846_v25 = vld [vmem:[%s3519_s2 + $0x30] sm:$0xff]   ;;  %v1847_v28 = vld [vmem:[%s3519_s2 + $0x38] sm:$0xff]   ;;  %v1735_v29 = vunpack.c.l.bf16 %v1845_v23  ;;  %s2118_s3 = smov [#allocation4]   ;;  %s1467_s30 = sshll.u32 %s3521_s4, 4  ;;  %s1468_s30 = int_to_ptr.hbm [resolvable:$true] %s1467_s30 }
   0x8   :  { %v1906_v22 = vpack.i.bf16 %v1720_v15, %v1719_v14  ;;  %v1736_v30 = vunpack.c.h.bf16 %v1845_v23  ;;  %v1739_v31 = vunpack.c.l.bf16 %v1846_v25  ;;  %v1740_v32 = vunpack.c.h.bf16 %v1846_v25  ;;  %v1848_v38 = vld [vmem:[%s3519_s2 + $0x40] sm:$0xff]   ;;  %v1849_v40 = vld [vmem:[%s3519_s2 + $0x48] sm:$0xff]   ;;  %v1850_v42 = vld [vmem:[%s3519_s2 + $0x50] sm:$0xff]   ;;  %s1465_s27 = sshll.u32 %s2118_s3, 4  ;;  %s1466_s27 = int_to_ptr.vmem [resolvable:$true] %s1465_s27 }
   0x9   :  { %v1917_v26 = vpack.i.bf16 %v1728_v19, %v1727_v18  ;;  %v1923_v27 = vpack.i.bf16 %v1732_v21, %v1731_v20  ;;  %v866_v33 = vsel %vm753_vm0, %v1710_v24, 0  ;;  %v1743_v34 = vunpack.c.l.bf16 %v1847_v28  ;;  %v1709_v39 = vld [vmem:[%s3517_s0 + $0x20] sm:$0xff]  ;;  %v1851_v52 = vld [vmem:[%s3519_s2 + $0x58] sm:$0xff]   ;;  %v1853_v56 = vld [vmem:[%s3519_s2 + $0x68] sm:$0xff]  }
   0xa   :  { %v1744_v35 = vunpack.c.h.bf16 %v1847_v28  ;;  %v1928_v36 = vpack.i.bf16 %v1736_v30, %v1735_v29  ;;  %v1933_v37 = vpack.i.bf16 %v1740_v32, %v1739_v31  ;;  %v1747_v43 = vunpack.c.l.bf16 %v1848_v38  ;;  %v1708_v53 = vld [vmem:[%s3517_s0 + $0x18] sm:$0xff]  ;;  %v1852_v54 = vld [vmem:[%s3519_s2 + $0x60] sm:$0xff]   ;;  %v1854_v2 = vld [vmem:[%s3519_s2 + $0x70] sm:$0xff]  }
   0xb   :  { %875 = vmatpush.bf16.xpose.msra.mxu0 %v869_v17  ;;  %1875 = vmatpush.bf16.xpose.msra.mxu1 %v869_v17  ;;  %v1748_v44 = vunpack.c.h.bf16 %v1848_v38  ;;  %v1751_v45 = vunpack.c.l.bf16 %v1849_v40  ;;  %v1752_v46 = vunpack.c.h.bf16 %v1849_v40  ;;  %v863_v47 = vsel %vm753_vm0, %v1709_v39, 0  ;;  %v1707_v3 = vld [vmem:[%s3517_s0 + $0x10] sm:$0xff]  ;;  %v1855_v4 = vld [vmem:[%s3519_s2 + $0x78] sm:$0xff]   ;;  %v1856_v6 = vld [vmem:[%s3519_s2 + $0x80] sm:$0xff]  }
   0xc   :  { %1876 = vmatpush.bf16.xpose.msra.mxu2 %v869_v17  ;;  %1877 = vmatpush.bf16.xpose.msra.mxu3 %v869_v17  ;;  %v1938_v41 = vpack.i.bf16 %v1744_v35, %v1743_v34  ;;  %v1755_v48 = vunpack.c.l.bf16 %v1850_v42  ;;  %v1756_v49 = vunpack.c.h.bf16 %v1850_v42  ;;  %v1759_v57 = vunpack.c.l.bf16 %v1851_v52  ;;  %v1857_v16 = vld [vmem:[%s3519_s2 + $0x88] sm:$0xff]   ;;  %v1858_v18 = vld [vmem:[%s3519_s2 + $0x90] sm:$0xff]   ;;  %v1859_v20 = vld [vmem:[%s3519_s2 + $0x98] sm:$0xff]  }
   0xd   :  { %1924 = vperm.xlu2 %1922, %v1923_v27   ;;  %v1943_v50 = vpack.i.bf16 %v1748_v44, %v1747_v43  ;;  %v1948_v51 = vpack.i.bf16 %v1752_v46, %v1751_v45  ;;  %v1760_v58 = vunpack.c.h.bf16 %v1851_v52  ;;  %v1763_v59 = vunpack.c.l.bf16 %v1852_v54  ;;  %v1706_v17 = vld [vmem:[%s3517_s0 + $0x8] sm:$0xff]  ;;  %v1860_v30 = vld [vmem:[%s3519_s2 + $0xa0] sm:$0xff]   ;;  %v1862_v34 = vld [vmem:[%s3519_s2 + $0xb0] sm:$0xff]  }
   0xe   :  { %1907 = vperm.xlu0 %1900, %v1906_v22   ;;  %v1953_v55 = vpack.i.bf16 %v1756_v49, %v1755_v48  ;;  %v1764_v60 = vunpack.c.h.bf16 %v1852_v54  ;;  %v860_v61 = vsel %vm753_vm0, %v1708_v53, 0  ;;  %v1767_v62 = vunpack.c.l.bf16 %v1853_v56  ;;  %v1705_v31 = vld [vmem:[%s3517_s0] sm:$0xff]  ;;  %v1861_v32 = vld [vmem:[%s3519_s2 + $0xa8] sm:$0xff]   ;;  %v1863_v44 = vld [vmem:[%s3519_s2 + $0xb8] sm:$0xff]  }
   0xf   :  { %1918 = vperm.xlu1 %1911, %v1917_v26   ;;  %v1768_v63 = vunpack.c.h.bf16 %v1853_v56  ;;  %v1958_v0 = vpack.i.bf16 %v1760_v58, %v1759_v57  ;;  %v1771_v7 = vunpack.c.l.bf16 %v1854_v2  ;;  %v1772_v8 = vunpack.c.h.bf16 %v1854_v2  ;;  %v1864_v45 = vld [vmem:[%s3519_s2 + $0xc0] sm:$0xff]  }
  0x10   :  { %v1963_v1 = vpack.i.bf16 %v1764_v60, %v1763_v59  ;;  %v1775_v9 = vunpack.c.l.bf16 %v1855_v4  ;;  %v1776_v10 = vunpack.c.h.bf16 %v1855_v4  ;;  %v857_v11 = vsel %vm753_vm0, %v1707_v3, 0  ;;  %v1673_v48 = vld [vmem:[%s3518_s1] sm:$0xff]  ;;  %v1866_v60 = vld [vmem:[%s3519_s2 + $0xd0] sm:$0xff]  }
  0x11   :  { %v1968_v5 = vpack.i.bf16 %v1768_v63, %v1767_v62  ;;  %v1779_v12 = vunpack.c.l.bf16 %v1856_v6  ;;  %v1780_v13 = vunpack.c.h.bf16 %v1856_v6  ;;  %v1973_v14 = vpack.i.bf16 %v1772_v8, %v1771_v7  ;;  %v1681_v49 = vld [vmem:[%s3518_s1 + $0x40] sm:$0xff]  ;;  %v1867_v62 = vld [vmem:[%s3519_s2 + $0xd8] sm:$0xff]   ;;  %v1869_v8 = vld [vmem:[%s3519_s2 + $0xe8] sm:$0xff]  }
  0x12   :  { %v1978_v15 = vpack.i.bf16 %v1776_v10, %v1775_v9  ;;  %v1783_v21 = vunpack.c.l.bf16 %v1857_v16  ;;  %v1784_v22 = vunpack.c.h.bf16 %v1857_v16  ;;  %v1787_v23 = vunpack.c.l.bf16 %v1858_v18  ;;  %v1689_v52 = vld [vmem:[%s3518_s1 + $0x80] sm:$0xff]  ;;  %v1870_v10 = vld [vmem:[%s3519_s2 + $0xf0] sm:$0xff]   ;;  %v1690_v16 = vld [vmem:[%s3518_s1 + $0x88] sm:$0xff] }
  0x13   :  { %876 = vmatpush.bf16.xpose.msra.mxu0 %v866_v33  ;;  %1878 = vmatpush.bf16.xpose.msra.mxu1 %v866_v33  ;;  %v1983_v19 = vpack.i.bf16 %v1780_v13, %v1779_v12  ;;  %v1788_v24 = vunpack.c.h.bf16 %v1858_v18  ;;  %v854_v25 = vsel %vm753_vm0, %v1706_v17, 0  ;;  %v1791_v26 = vunpack.c.l.bf16 %v1859_v20  ;;  %v1697_v53 = vld [vmem:[%s3518_s1 + $0xc0] sm:$0xff]  ;;  %v1674_v12 = vld [vmem:[%s3518_s1 + $0x8] sm:$0xff] }
  0x14   :  { %1879 = vmatpush.bf16.xpose.msra.mxu2 %v866_v33  ;;  %1880 = vmatpush.bf16.xpose.msra.mxu3 %v866_v33  ;;  %v1792_v27 = vunpack.c.h.bf16 %v1859_v20  ;;  %v1988_v28 = vpack.i.bf16 %v1784_v22, %v1783_v21  ;;  %v1795_v35 = vunpack.c.l.bf16 %v1860_v30  ;;  %v1800_v38 = vunpack.c.h.bf16 %v1861_v32  ;;  %v1868_v63 = vld [vmem:[%s3519_s2 + $0xe0] sm:$0xff]   ;;  %v1682_v13 = vld [vmem:[%s3518_s1 + $0x48] sm:$0xff] }
  0x15   :  { %1929 = vperm.xlu2 %1922, %v1928_v36   ;;  %v1993_v29 = vpack.i.bf16 %v1788_v24, %v1787_v23  ;;  %v1796_v36 = vunpack.c.h.bf16 %v1860_v30  ;;  %v851_v39 = vsel %vm753_vm0, %v1705_v31, 0  ;;  %v1803_v40 = vunpack.c.l.bf16 %v1862_v34  ;;  %v1698_v17 = vld [vmem:[%s3518_s1 + $0xc8] sm:$0xff]  ;;  %v1684_v30 = vld [vmem:[%s3518_s1 + $0x58] sm:$0xff] }
  0x16   :  { %1934 = vperm.xlu0 %1900, %v1933_v37   ;;  %v1998_v33 = vpack.i.bf16 %v1792_v27, %v1791_v26  ;;  %v1799_v37 = vunpack.c.l.bf16 %v1861_v32  ;;  %v1811_v54 = vunpack.c.l.bf16 %v1864_v45  ;;  %v1823_v2 = vunpack.c.l.bf16 %v1867_v62  ;;  %v1683_v26 = vld [vmem:[%s3518_s1 + $0x50] sm:$0xff]  ;;  %v1692_v31 = vld [vmem:[%s3518_s1 + $0x98] sm:$0xff] }
  0x17   :  { %1939 = vperm.xlu1 %1911, %v1938_v41   ;;  %v1804_v41 = vunpack.c.h.bf16 %v1862_v34  ;;  %v2003_v42 = vpack.i.bf16 %v1796_v36, %v1795_v35  ;;  %v1824_v3 = vunpack.c.h.bf16 %v1867_v62  ;;  %v1827_v4 = vunpack.c.l.bf16 %v1868_v63  ;;  %v1691_v27 = vld [vmem:[%s3518_s1 + $0x90] sm:$0xff]  ;;  %v1700_v32 = vld [vmem:[%s3518_s1 + $0xd8] sm:$0xff]  ;;  %v1685_v34 = vld [vmem:[%s3518_s1 + $0x60] sm:$0xff] }
  0x18   :  { %v2008_v43 = vpack.i.bf16 %v1800_v38, %v1799_v37  ;;  %v1835_v18 = vunpack.c.l.bf16 %v1870_v10  ;;  %v1693_v35 = vld [vmem:[%s3518_s1 + $0xa0] sm:$0xff] }
  0x19   :  { %v2013_v46 = vpack.i.bf16 %v1804_v41, %v1803_v40  ;;  %v2038_v7 = vpack.i.bf16 %v1824_v3, %v1823_v2  ;;  %v1701_v36 = vld [vmem:[%s3518_s1 + $0xe0] sm:$0xff]  ;;  %v1686_v40 = vld [vmem:[%s3518_s1 + $0x68] sm:$0xff] }
  0x1a   :  { %v1694_v41 = vld [vmem:[%s3518_s1 + $0xa8] sm:$0xff] }
  0x1b   :  { %877 = vmatpush.bf16.xpose.msra.mxu0 %v863_v47  ;;  %1881 = vmatpush.bf16.xpose.msra.mxu1 %v863_v47 }
  0x1c   :  { %1882 = vmatpush.bf16.xpose.msra.mxu2 %v863_v47  ;;  %1883 = vmatpush.bf16.xpose.msra.mxu3 %v863_v47  ;;  %v1865_v47 = vld [vmem:[%s3519_s2 + $0xc8] sm:$0xff]  }
  0x1d   :  { %1944 = vperm.xlu2 %1922, %v1943_v50   ;;  %v1807_v50 = vunpack.c.l.bf16 %v1863_v44  ;;  %v1815_v56 = vunpack.c.l.bf16 %v1865_v47  ;;  %v1816_v57 = vunpack.c.h.bf16 %v1865_v47  ;;  %v1687_v47 = vld [vmem:[%s3518_s1 + $0x70] sm:$0xff] }
  0x1e   :  { %1949 = vperm.xlu0 %1900, %v1948_v51   ;;  %v1808_v51 = vunpack.c.h.bf16 %v1863_v44 }
  0x1f   :  { %1954 = vperm.xlu1 %1911, %v1953_v55   ;;  %v1812_v55 = vunpack.c.h.bf16 %v1864_v45 }
  0x20   :  { %v2018_v58 = vpack.i.bf16 %v1808_v51, %v1807_v50 }
  0x21   :  { %v2023_v59 = vpack.i.bf16 %v1812_v55, %v1811_v54  ;;  %v1680_v55 = vld [vmem:[%s3518_s1 + $0x38] sm:$0xff] }
  0x23   :  { %878 = vmatpush.bf16.xpose.msra.mxu0 %v860_v61  ;;  %1884 = vmatpush.bf16.xpose.msra.mxu1 %v860_v61 }
  0x24   :  { %1885 = vmatpush.bf16.xpose.msra.mxu2 %v860_v61  ;;  %1886 = vmatpush.bf16.xpose.msra.mxu3 %v860_v61  ;;  %v2028_v61 = vpack.i.bf16 %v1816_v57, %v1815_v56  ;;  %v1688_v56 = vld [vmem:[%s3518_s1 + $0x78] sm:$0xff] }
  0x25   :  { %1959 = vperm.xlu2 %1922, %v1958_v0   ;;  %v1819_v0 = vunpack.c.l.bf16 %v1866_v60  ;;  %v1696_v57 = vld [vmem:[%s3518_s1 + $0xb8] sm:$0xff] }
  0x26   :  { %1964 = vperm.xlu0 %1900, %v1963_v1   ;;  %v1820_v1 = vunpack.c.h.bf16 %v1866_v60 }
  0x27   :  { %1969 = vperm.xlu1 %1911, %v1968_v5   ;;  %v1828_v5 = vunpack.c.h.bf16 %v1868_v63 }
  0x28   :  { %v2033_v6 = vpack.i.bf16 %v1820_v1, %v1819_v0 }
  0x29   :  { %v2043_v9 = vpack.i.bf16 %v1828_v5, %v1827_v4 }
  0x2b   :  { %879 = vmatpush.bf16.xpose.msra.mxu0 %v857_v11  ;;  %1887 = vmatpush.bf16.xpose.msra.mxu1 %v857_v11 }
  0x2c   :  { %1888 = vmatpush.bf16.xpose.msra.mxu2 %v857_v11  ;;  %1889 = vmatpush.bf16.xpose.msra.mxu3 %v857_v11  ;;  %v1871_v11 = vld [vmem:[%s3519_s2 + $0xf8] sm:$0xff]  }
  0x2d   :  { %1974 = vperm.xlu2 %1922, %v1973_v14   ;;  %v1831_v14 = vunpack.c.l.bf16 %v1869_v8  ;;  %v1839_v20 = vunpack.c.l.bf16 %v1871_v11  ;;  %v1840_v21 = vunpack.c.h.bf16 %v1871_v11 }
  0x2e   :  { %1979 = vperm.xlu0 %1900, %v1978_v15   ;;  %v1832_v15 = vunpack.c.h.bf16 %v1869_v8 }
  0x2f   :  { %1984 = vperm.xlu1 %1911, %v1983_v19   ;;  %v1836_v19 = vunpack.c.h.bf16 %v1870_v10  ;;  %v2058_v24 = vpack.i.bf16 %v1840_v21, %v1839_v20 }
  0x30   :  { %v2048_v22 = vpack.i.bf16 %v1832_v15, %v1831_v14 }
  0x31   :  { %v2053_v23 = vpack.i.bf16 %v1836_v19, %v1835_v18 }
  0x33   :  { %880 = vmatpush.bf16.xpose.msra.mxu0 %v854_v25  ;;  %1890 = vmatpush.bf16.xpose.msra.mxu1 %v854_v25 }
  0x34   :  { %1891 = vmatpush.bf16.xpose.msra.mxu2 %v854_v25  ;;  %1892 = vmatpush.bf16.xpose.msra.mxu3 %v854_v25  ;;  %v1675_v25 = vld [vmem:[%s3518_s1 + $0x10] sm:$0xff] }
  0x35   :  { %1989 = vperm.xlu2 %1922, %v1988_v28   ;;  %v1699_v28 = vld [vmem:[%s3518_s1 + $0xd0] sm:$0xff] }
  0x36   :  { %1994 = vperm.xlu0 %1900, %v1993_v29   ;;  %v1676_v29 = vld [vmem:[%s3518_s1 + $0x18] sm:$0xff] }
  0x37   :  { %1999 = vperm.xlu1 %1911, %v1998_v33   ;;  %v1677_v33 = vld [vmem:[%s3518_s1 + $0x20] sm:$0xff] }
  0x3b   :  { %881 = vmatpush.bf16.xpose.msra.mxu0 %v851_v39  ;;  %1893 = vmatpush.bf16.xpose.msra.mxu1 %v851_v39 }
  0x3c   :  { %1894 = vmatpush.bf16.xpose.msra.mxu2 %v851_v39  ;;  %1895 = vmatpush.bf16.xpose.msra.mxu3 %v851_v39  ;;  %v1678_v39 = vld [vmem:[%s3518_s1 + $0x28] sm:$0xff] }
  0x3d   :  { %2004 = vperm.xlu2 %1922, %v2003_v42   ;;  %v1702_v42 = vld [vmem:[%s3518_s1 + $0xe8] sm:$0xff] }
  0x3e   :  { %2009 = vperm.xlu0 %1900, %v2008_v43  }
  0x3f   :  { %2014 = vperm.xlu1 %1911, %v2013_v46   ;;  %v1679_v46 = vld [vmem:[%s3518_s1 + $0x30] sm:$0xff] }
  0x42   :  { %1641 = vmatmul.msk.bf16.vlgmr.msra.gmra.mxu0 %vm753_vm0, %v1673_v48  ;;  %1649 = vmatmul.msk.bf16.vlgmr.msra.gmra.mxu1 %vm753_vm0, %v1681_v49  ;;  %v1695_v48 = vld [vmem:[%s3518_s1 + $0xb0] sm:$0xff] }
  0x43   :  { %1657 = vmatmul.msk.bf16.vlgmr.msra.gmra.mxu2 %vm753_vm0, %v1689_v52  ;;  %1665 = vmatmul.msk.bf16.vlgmr.msra.gmra.mxu3 %vm753_vm0, %v1697_v53  ;;  %v1703_v49 = vld [vmem:[%s3518_s1 + $0xf0] sm:$0xff] }
  0x45   :  { %2019 = vperm.xlu2 %1922, %v2018_v58   ;;  %v1704_v58 = vld [vmem:[%s3518_s1 + $0xf8] sm:$0xff]  ;;  %s2117_s1 = smov [#allocation2]  }
  0x46   :  { %2024 = vperm.xlu0 %1900, %v2023_v59   ;;  %s1454_s24 = sshll.u32 %s2117_s1, 4  ;;  %s1455_s24 = int_to_ptr.vmem [resolvable:$true] %s1454_s24 }
  0x47   :  { %2029 = vperm.xlu1 %1911, %v2028_v61  }
  0x4d   :  { %2034 = vperm.xlu2 %1922, %v2033_v6  }
  0x4e   :  { %2039 = vperm.xlu0 %1900, %v2038_v7  }
  0x4f   :  { %2044 = vperm.xlu1 %1911, %v2043_v9  }
  0x52   :  { %1642 = vmatmul.msk.bf16.gmra.mxu0 %vm753_vm0, %v1674_v12  ;;  %1650 = vmatmul.msk.bf16.gmra.mxu1 %vm753_vm0, %v1682_v13 }
  0x53   :  { %1658 = vmatmul.msk.bf16.gmra.mxu2 %vm753_vm0, %v1690_v16  ;;  %1666 = vmatmul.msk.bf16.gmra.mxu3 %vm753_vm0, %v1698_v17 }
  0x55   :  { %2049 = vperm.xlu2 %1922, %v2048_v22  }
  0x56   :  { %2054 = vperm.xlu0 %1900, %v2053_v23  }
  0x57   :  { %2059 = vperm.xlu1 %1911, %v2058_v24  }
  0x62   :  { %1643 = vmatmul.msk.bf16.gmra.mxu0 %vm753_vm0, %v1675_v25  ;;  %1651 = vmatmul.msk.bf16.gmra.mxu1 %vm753_vm0, %v1683_v26 }
  0x63   :  { %1659 = vmatmul.msk.bf16.gmra.mxu2 %vm753_vm0, %v1691_v27  ;;  %1667 = vmatmul.msk.bf16.gmra.mxu3 %vm753_vm0, %v1699_v28 }
  0x67   :  { %v2394_v51 = vpop.permute.xlu2 %1924 }
  0x6f   :  { %v2400_v54 = vpop.permute.xlu2 %1929 }
  0x72   :  { %1644 = vmatmul.msk.bf16.gmra.mxu0 %vm753_vm0, %v1676_v29  ;;  %1652 = vmatmul.msk.bf16.gmra.mxu1 %vm753_vm0, %v1684_v30 }
  0x73   :  { %1660 = vmatmul.msk.bf16.gmra.mxu2 %vm753_vm0, %v1692_v31  ;;  %1668 = vmatmul.msk.bf16.gmra.mxu3 %vm753_vm0, %v1700_v32 }
  0x77   :  { %v1945_v61 = vpop.permute.xlu2 %1944 }
  0x78   :  { %v1903_v37 = vpop.permute.xlu0 %1902  ;;  %v1946_v4 = vunpack.i.l.bf16 %v1945_v61  ;;  %v1947_v16 = vunpack.i.h.bf16 %v1945_v61 }
  0x79   :  { %v2370_v43 = vpop.permute.xlu1 %1913  ;;  %v1904_v3 = vunpack.i.l.bf16 %v1903_v37  ;;  %v1905_v8 = vunpack.i.h.bf16 %v1903_v37 }
  0x7f   :  { %v2426_v2 = vpop.permute.xlu2 %1959 }
  0x80   :  { %v2352_v38 = vpop.permute.xlu0 %1907 }
  0x81   :  { %v2374_v45 = vpop.permute.xlu1 %1918  ;;  %v1909_v29 = vunpack.i.l.bf16 %v2352_v38 }
  0x82   :  { %1645 = vmatmul.msk.bf16.gmra.mxu0 %vm753_vm0, %v1677_v33  ;;  %1653 = vmatmul.msk.bf16.gmra.mxu1 %vm753_vm0, %v1685_v34 }
  0x83   :  { %1661 = vmatmul.msk.bf16.gmra.mxu2 %vm753_vm0, %v1693_v35  ;;  %1669 = vmatmul.msk.bf16.gmra.mxu3 %vm753_vm0, %v1701_v36 }
  0x87   :  { %v2439_v18 = vpop.permute.xlu2 %1974 }
  0x88   :  { %v2372_v44 = vpop.permute.xlu0 %1934 }
  0x89   :  { %v2396_v52 = vpop.permute.xlu1 %1939 }
  0x90   :  { %v2388_v50 = vpop.permute.xlu0 %1949 }
  0x91   :  { %v2414_v59 = vpop.permute.xlu1 %1954  ;;  %v1951_v33 = vunpack.i.l.bf16 %v2388_v50 }
  0x92   :  { %1646 = vmatmul.msk.bf16.gmra.mxu0 %vm753_vm0, %v1678_v39  ;;  %1654 = vmatmul.msk.bf16.gmra.mxu1 %vm753_vm0, %v1686_v40  ;;  %v1990_v40 = vpop.permute.xlu2 %1989 }
  0x93   :  { %1662 = vmatmul.msk.bf16.gmra.mxu2 %vm753_vm0, %v1694_v41  ;;  %1670 = vmatmul.msk.bf16.gmra.mxu3 %vm753_vm0, %v1702_v42 }
  0x98   :  { %v2398_v53 = vpop.permute.xlu0 %1964 }
  0x99   :  { %v2422_v62 = vpop.permute.xlu1 %1969 }
  0xa0   :  { %v2420_v60 = vpop.permute.xlu0 %1979 }
  0xa1   :  { %v1985_v7 = vpop.permute.xlu1 %1984 }
  0xa2   :  { %1647 = vmatmul.msk.bf16.gmra.mxu0 %vm753_vm0, %v1679_v46  ;;  %1655 = vmatmul.msk.bf16.gmra.mxu1 %vm753_vm0, %v1687_v47  ;;  %v1987_v20 = vunpack.i.h.bf16 %v1985_v7  ;;  %v1986_v25 = vunpack.i.l.bf16 %v1985_v7 }
  0xa3   :  { %1663 = vmatmul.msk.bf16.gmra.mxu2 %vm753_vm0, %v1695_v48  ;;  %1671 = vmatmul.msk.bf16.gmra.mxu3 %vm753_vm0, %v1703_v49 }
  0xa8   :  { %v2424_v63 = vpop.permute.xlu0 %1994 }
  0xa9   :  { %v2446_v28 = vpop.permute.xlu1 %1999 }
  0xb0   :  { %v2434_v14 = vpop.permute.xlu0 %2009 }
  0xb1   :  { %v2466_v61 = vpop.permute.xlu1 %2014 }
  0xb2   :  { %1648 = vmatmul.msk.bf16.gmra.mxu0 %vm753_vm0, %v1680_v55  ;;  %1656 = vmatmul.msk.bf16.gmra.mxu1 %vm753_vm0, %v1688_v56  ;;  %v1910_v56 = vunpack.i.h.bf16 %v2352_v38 }
  0xb3   :  { %1664 = vmatmul.msk.bf16.gmra.mxu2 %vm753_vm0, %v1696_v57  ;;  %1672 = vmatmul.msk.bf16.gmra.mxu3 %vm753_vm0, %v1704_v58 }
  0xb8   :  { %v2025_v32 = vpop.permute.xlu0 %2024 }
  0xb9   :  { %v2027_v39 = vunpack.i.h.bf16 %v2025_v32  ;;  %v2026_v48 = vunpack.i.l.bf16 %v2025_v32 }
  0xbf   :  { %v883_v0 = vpop.f32.mrf.mxu0  ;;  %v923_v1 = vpop.f32.mrf.mxu1 }
  0xc0   :  { %v2428_v5 = vadd.f32 %v1904_v3, %v883_v0  ;;  %v2430_v6 = vadd.f32 %v1946_v4, %v923_v1  ;;  %v1952_v0 = vunpack.i.h.bf16 %v2388_v50  ;;  %v1915_v50 = vunpack.i.l.bf16 %v2370_v43 }
  0xc2   :  { %v1043_v15 = vmax.f32 %v2428_v5, %v2430_v6 }
  0xc6   :  { %v963_v9 = vpop.f32.mrf.mxu2  ;;  %v1003_v10 = vpop.f32.mrf.mxu3 }
  0xc7   :  { %v885_v11 = vpop.f32.mrf.mxu0  ;;  %v925_v12 = vpop.f32.mrf.mxu1  ;;  %v2450_v31 = vadd.f32 %v1986_v25, %v963_v9  ;;  %v2464_v58 = vadd.f32 %v2026_v48, %v1003_v10  ;;  %v1991_v10 = vunpack.i.l.bf16 %v1990_v40 }
  0xc8   :  { %v2432_v13 = vadd.f32 %v1905_v8, %v885_v11  ;;  %v2441_v19 = vadd.f32 %v1947_v16, %v925_v12  ;;  %v1992_v8 = vunpack.i.h.bf16 %v1990_v40 }
  0xc9   :  { %3572 = vst [vmem:[#allocation9_spill] sm:$0xff] %v2464_v58 }
  0xca   :  { %v1044_v17 = vmax.f32 %v2432_v13, %v1043_v15 }
  0xcc   :  { %v1045_v23 = vmax.f32 %v2441_v19, %v1044_v17 }
  0xce   :  { %v965_v21 = vpop.f32.mrf.mxu2  ;;  %v1005_v22 = vpop.f32.mrf.mxu3 }
  0xcf   :  { %v2444_v24 = vadd.f32 %v1987_v20, %v965_v21  ;;  %v888_v26 = vpop.f32.mrf.mxu0  ;;  %v928_v27 = vpop.f32.mrf.mxu1  ;;  %v2460_v47 = vadd.f32 %v2027_v39, %v1005_v22  ;;  %v1956_v22 = vunpack.i.l.bf16 %v2414_v59 }
  0xd0   :  { %v2454_v35 = vadd.f32 %v1909_v29, %v888_v26  ;;  %v2457_v37 = vadd.f32 %v1951_v33, %v928_v27  ;;  %v2482_v21 = vpop.permute.xlu2 %2004  ;;  %v2030_v26 = vpop.permute.xlu1 %2029  ;;  %v1996_v27 = vunpack.i.l.bf16 %v2424_v63 }
  0xd1   :  { %v1046_v30 = vmax.f32 %v2444_v24, %v1045_v23  ;;  %3571 = vst [vmem:[#allocation8_spill] sm:$0xff] %v2460_v47  ;;  %v2032_v39 = vunpack.i.h.bf16 %v2030_v26 }
  0xd3   :  { %v1047_v34 = vmax.f32 %v2450_v31, %v1046_v30 }
  0xd5   :  { %v1048_v36 = vmax.f32 %v2454_v35, %v1047_v34 }
  0xd6   :  { %v968_v41 = vpop.f32.mrf.mxu2  ;;  %v1008_v42 = vpop.f32.mrf.mxu3 }
  0xd7   :  { %v1049_v46 = vmax.f32 %v2457_v37, %v1048_v36  ;;  %v890_v49 = vpop.f32.mrf.mxu0  ;;  %v930_v55 = vpop.f32.mrf.mxu1  ;;  %v2480_v20 = vadd.f32 %v1991_v10, %v968_v41 }
  0xd8   :  { %v2470_v3 = vadd.f32 %v1910_v56, %v890_v49  ;;  %v2473_v7 = vadd.f32 %v1952_v0, %v930_v55  ;;  %v2031_v49 = vunpack.i.l.bf16 %v2030_v26  ;;  %v1916_v55 = vunpack.i.h.bf16 %v2370_v43  ;;  %v2502_v0 = vpop.permute.xlu2 %2019 }
  0xd9   :  { %v1050_v57 = vmax.f32 %v2460_v47, %v1049_v46 }
  0xdb   :  { %v1051_v1 = vmax.f32 %v2464_v58, %v1050_v57  ;;  %v2500_v57 = vadd.f32 %v2031_v49, %v1008_v42  ;;  %v1920_v42 = vunpack.i.l.bf16 %v2374_v45  ;;  %v1977_v58 = vunpack.i.h.bf16 %v2439_v18 }
  0xdd   :  { %v1055_v4 = vmax.f32 %v1051_v1, %v2470_v3  ;;  %3574 = vst [vmem:[#allocation11_spill] sm:$0xff] %v2500_v57  ;;  %v1957_v1 = vunpack.i.h.bf16 %v2414_v59  ;;  %v1961_v59 = vunpack.i.l.bf16 %v2426_v2 }
  0xde   :  { %v970_v9 = vpop.f32.mrf.mxu2  ;;  %v1010_v11 = vpop.f32.mrf.mxu3 }
  0xdf   :  { %v1059_v38 = vmax.f32 %v1055_v4, %v2473_v7  ;;  %v2476_v12 = vadd.f32 %v1992_v8, %v970_v9  ;;  %v893_v15 = vpop.f32.mrf.mxu0  ;;  %v933_v16 = vpop.f32.mrf.mxu1  ;;  %v2496_v48 = vadd.f32 %v2032_v39, %v1010_v11  ;;  %v1997_v11 = vunpack.i.h.bf16 %v2424_v63 }
  0xe0   :  { %v2486_v25 = vadd.f32 %v1915_v50, %v893_v15  ;;  %v2490_v30 = vadd.f32 %v1956_v22, %v933_v16  ;;  %v2001_v63 = vunpack.i.l.bf16 %v2446_v28 }
  0xe1   :  { %v1063_v17 = vmax.f32 %v1059_v38, %v2476_v12  ;;  %3573 = vst [vmem:[#allocation10_spill] sm:$0xff] %v2496_v48 }
  0xe3   :  { %v1067_v23 = vmax.f32 %v1063_v17, %v2480_v20 }
  0xe5   :  { %v1071_v29 = vmax.f32 %v1067_v23, %v2486_v25 }
  0xe6   :  { %v973_v32 = vpop.f32.mrf.mxu2  ;;  %v1013_v33 = vpop.f32.mrf.mxu3 }
  0xe7   :  { %v1075_v34 = vmax.f32 %v1071_v29, %v2490_v30  ;;  %v2493_v36 = vadd.f32 %v1996_v27, %v973_v32  ;;  %v895_v40 = vpop.f32.mrf.mxu0  ;;  %v935_v41 = vpop.f32.mrf.mxu1 }
  0xe8   :  { %v2506_v8 = vadd.f32 %v1916_v55, %v895_v40  ;;  %v2510_v15 = vadd.f32 %v1957_v1, %v935_v41  ;;  %v2035_v29 = vpop.permute.xlu2 %2034  ;;  %v2040_v55 = vpop.permute.xlu0 %2039 }
  0xe9   :  { %v1079_v46 = vmax.f32 %v1075_v34, %v2493_v36  ;;  %v2037_v41 = vunpack.i.h.bf16 %v2035_v29 }
  0xeb   :  { %v1083_v56 = vmax.f32 %v1079_v46, %v2496_v48 }
  0xed   :  { %v1087_v4 = vmax.f32 %v1083_v56, %v2500_v57  ;;  %v1937_v57 = vunpack.i.h.bf16 %v2372_v44 }
  0xee   :  { %v975_v9 = vpop.f32.mrf.mxu2  ;;  %v1015_v38 = vpop.f32.mrf.mxu3 }
  0xef   :  { %v1091_v10 = vmax.f32 %v1087_v4, %v2506_v8  ;;  %v898_v43 = vpop.f32.mrf.mxu0  ;;  %v938_v16 = vpop.f32.mrf.mxu1  ;;  %v2514_v17 = vadd.f32 %v1997_v11, %v975_v9  ;;  %v2528_v1 = vadd.f32 %v2037_v41, %v1015_v38  ;;  %v2036_v4 = vunpack.i.l.bf16 %v2035_v29 }
  0xf0   :  { %v2518_v23 = vadd.f32 %v1920_v42, %v898_v43  ;;  %v2522_v27 = vadd.f32 %v1961_v59, %v938_v16  ;;  %v1921_v43 = vunpack.i.h.bf16 %v2374_v45  ;;  %v2042_v45 = vunpack.i.h.bf16 %v2040_v55 }
  0xf1   :  { %v1095_v50 = vmax.f32 %v1091_v10, %v2510_v15  ;;  %3575 = vst [vmem:[#allocation12_spill] sm:$0xff] %v2528_v1  ;;  %v2531_v11 = vadd.f32 %v2036_v4, %v1013_v33  ;;  %v2041_v10 = vunpack.i.l.bf16 %v2040_v55  ;;  %v2002_v33 = vunpack.i.h.bf16 %v2446_v28 }
  0xf3   :  { %v1099_v22 = vmax.f32 %v1095_v50, %v2514_v17  ;;  %3576 = vst [vmem:[#allocation13_spill] sm:$0xff] %v2531_v11 }
  0xf5   :  { %v1052_v26 = vmax.f32 %v2518_v23, %v1099_v22  ;;  %v1962_v22 = vunpack.i.h.bf16 %v2426_v2 }
  0xf6   :  { %v978_v32 = vpop.f32.mrf.mxu2  ;;  %v1018_v34 = vpop.f32.mrf.mxu3 }
  0xf7   :  { %v1056_v39 = vmax.f32 %v1052_v26, %v2522_v27  ;;  %v2525_v40 = vadd.f32 %v2001_v63, %v978_v32  ;;  %v900_v46 = vpop.f32.mrf.mxu0  ;;  %v940_v49 = vpop.f32.mrf.mxu1  ;;  %v2535_v42 = vadd.f32 %v2041_v10, %v1018_v34  ;;  %v1966_v10 = vunpack.i.l.bf16 %v2398_v53 }
  0xf8   :  { %v2539_v38 = vadd.f32 %v1921_v43, %v900_v46 }
  0xf9   :  { %v1060_v56 = vmax.f32 %v1056_v39, %v2525_v40  ;;  %3577 = vst [vmem:[#allocation14_spill] sm:$0xff] %v2535_v42  ;;  %v2543_v39 = vadd.f32 %v1962_v22, %v940_v49 }
  0xfb   :  { %v1064_v9 = vmax.f32 %v1060_v56, %v2528_v1  ;;  %v1926_v56 = vunpack.i.l.bf16 %v2394_v51  ;;  %v1932_v1 = vunpack.i.h.bf16 %v2400_v54 }
  0xfd   :  { %v1068_v16 = vmax.f32 %v1064_v9, %v2531_v11  ;;  %v1972_v11 = vunpack.i.h.bf16 %v2422_v62 }
  0xfe   :  { %v980_v50 = vpop.f32.mrf.mxu2  ;;  %v1020_v59 = vpop.f32.mrf.mxu3 }
  0xff   :  { %v1072_v63 = vmax.f32 %v1068_v16, %v2535_v42  ;;  %v903_v26 = vpop.f32.mrf.mxu0  ;;  %v943_v29 = vpop.f32.mrf.mxu1  ;;  %v2546_v41 = vadd.f32 %v2002_v33, %v980_v50  ;;  %v2550_v4 = vadd.f32 %v2042_v45, %v1020_v59  ;;  %v2006_v50 = vunpack.i.l.bf16 %v2482_v21 }
 0x100   :  { %v2554_v43 = vadd.f32 %v1926_v56, %v903_v26  ;;  %v2045_v16 = vpop.permute.xlu1 %2044  ;;  %v1927_v45 = vunpack.i.h.bf16 %v2394_v51 }
 0x101   :  { %v1076_v32 = vmax.f32 %v1072_v63, %v2539_v38  ;;  %3578 = vst [vmem:[#allocation15_spill] sm:$0xff] %v2550_v4  ;;  %v2558_v63 = vadd.f32 %v1966_v10, %v943_v29  ;;  %v2046_v33 = vunpack.i.l.bf16 %v2045_v16  ;;  %v2047_v51 = vunpack.i.h.bf16 %v2045_v16  ;;  %v2050_v16 = vpop.permute.xlu2 %2049 }
 0x103   :  { %v1080_v34 = vmax.f32 %v1076_v32, %v2543_v39 }
 0x105   :  { %v1084_v2 = vmax.f32 %v1080_v34, %v2546_v41 }
 0x106   :  { %v983_v46 = vpop.f32.mrf.mxu2  ;;  %v1023_v9 = vpop.f32.mrf.mxu3 }
 0x107   :  { %v1088_v28 = vmax.f32 %v1084_v2, %v2550_v4  ;;  %v905_v49 = vpop.f32.mrf.mxu0  ;;  %v945_v55 = vpop.f32.mrf.mxu1  ;;  %v2561_v32 = vadd.f32 %v2006_v50, %v983_v46  ;;  %v2565_v26 = vadd.f32 %v2046_v33, %v1023_v9  ;;  %v1967_v4 = vunpack.i.h.bf16 %v2398_v53 }
 0x109   :  { %v1092_v22 = vmax.f32 %v1088_v28, %v2554_v43  ;;  %3579 = vst [vmem:[#allocation16_spill] sm:$0xff] %v2561_v32  ;;  %v2569_v28 = vadd.f32 %v1927_v45, %v905_v49  ;;  %v2573_v50 = vadd.f32 %v1967_v4, %v945_v55 }
 0x10a   :  { %3580 = vst [vmem:[#allocation17_spill] sm:$0xff] %v2565_v26 }
 0x10b   :  { %v1096_v59 = vmax.f32 %v1092_v22, %v2558_v63  ;;  %v2007_v22 = vunpack.i.h.bf16 %v2482_v21 }
 0x10d   :  { %v1100_v34 = vmax.f32 %v1096_v59, %v2561_v32  ;;  %v1931_v59 = vunpack.i.l.bf16 %v2400_v54  ;;  %v2052_v54 = vunpack.i.h.bf16 %v2050_v16 }
 0x10e   :  { %v985_v56 = vpop.f32.mrf.mxu2  ;;  %v1025_v2 = vpop.f32.mrf.mxu3 }
 0x10f   :  { %v1103_v42 = vmax.f32 %v2565_v26, %v1100_v34  ;;  %v908_v29 = vpop.f32.mrf.mxu0  ;;  %v948_v10 = vpop.f32.mrf.mxu1  ;;  %v2576_v33 = vadd.f32 %v2007_v22, %v985_v56  ;;  %v2580_v34 = vadd.f32 %v2047_v51, %v1025_v2  ;;  %v1971_v26 = vunpack.i.l.bf16 %v2422_v62 }
 0x110   :  { %v2011_v56 = vunpack.i.l.bf16 %v2434_v14 }
 0x111   :  { %v1053_v46 = vmax.f32 %v2569_v28, %v1103_v42  ;;  %3581 = vst [vmem:[#allocation18_spill] sm:$0xff] %v2576_v33  ;;  %v2584_v42 = vadd.f32 %v1931_v59, %v908_v29 }
 0x112   :  { %3582 = vst [vmem:[#allocation19_spill] sm:$0xff] %v2580_v34 }
 0x113   :  { %v1057_v9 = vmax.f32 %v1053_v46, %v2573_v50  ;;  %v2588_v46 = vadd.f32 %v1971_v26, %v948_v10 }
 0x115   :  { %v1061_v53 = vmax.f32 %v1057_v9, %v2576_v33  ;;  %v2051_v9 = vunpack.i.l.bf16 %v2050_v16  ;;  %v2016_v16 = vunpack.i.l.bf16 %v2466_v61  ;;  %v1112_v33 = vlaneseq }
 0x116   :  { %v988_v49 = vpop.f32.mrf.mxu2  ;;  %v1028_v45 = vpop.f32.mrf.mxu3 }
 0x117   :  { %v1065_v21 = vmax.f32 %v1061_v53, %v2580_v34  ;;  %v910_v4 = vpop.f32.mrf.mxu0  ;;  %v950_v55 = vpop.f32.mrf.mxu1  ;;  %v2591_v51 = vadd.f32 %v2011_v56, %v988_v49  ;;  %v2595_v29 = vadd.f32 %v2051_v9, %v1028_v45  ;;  %v2665_v32 = vshrl.u32 %v1112_v33, 7 }
 0x118   :  { %v2603_v56 = vadd.f32 %v1972_v11, %v950_v55  ;;  %v2055_v11 = vpop.permute.xlu0 %2054 }
 0x119   :  { %v1069_v22 = vmax.f32 %v1065_v21, %v2584_v42  ;;  %3583 = vst [vmem:[#allocation20_spill] sm:$0xff] %v2591_v51  ;;  %v2599_v21 = vadd.f32 %v1932_v1, %v910_v4 }
 0x11a   :  { %3584 = vst [vmem:[#allocation21_spill] sm:$0xff] %v2595_v29 }
 0x11b   :  { %v1073_v2 = vmax.f32 %v1069_v22, %v2588_v46  ;;  %v2012_v22 = vunpack.i.h.bf16 %v2434_v14 }
 0x11d   :  { %v1077_v53 = vmax.f32 %v1073_v2, %v2591_v51  ;;  %v1936_v2 = vunpack.i.l.bf16 %v2372_v44  ;;  %v2057_v44 = vunpack.i.h.bf16 %v2055_v11  ;;  %v1941_v51 = vunpack.i.l.bf16 %v2396_v52 }
 0x11e   :  { %v990_v59 = vpop.f32.mrf.mxu2  ;;  %v1030_v34 = vpop.f32.mrf.mxu3 }
 0x11f   :  { %v1081_v48 = vmax.f32 %v1077_v53, %v2595_v29  ;;  %v913_v26 = vpop.f32.mrf.mxu0  ;;  %v953_v10 = vpop.f32.mrf.mxu1  ;;  %v2606_v9 = vadd.f32 %v2012_v22, %v990_v59  ;;  %v2610_v53 = vadd.f32 %v2052_v54, %v1030_v34  ;;  %v1976_v29 = vunpack.i.l.bf16 %v2439_v18 }
 0x121   :  { %v1085_v49 = vmax.f32 %v1081_v48, %v2599_v21  ;;  %3585 = vst [vmem:[#allocation22_spill] sm:$0xff] %v2610_v53  ;;  %v2614_v48 = vadd.f32 %v1936_v2, %v913_v26  ;;  %v2618_v22 = vadd.f32 %v1976_v29, %v953_v10  ;;  %v2017_v10 = vunpack.i.h.bf16 %v2466_v61 }
 0x122   :  { %v1981_v61 = vunpack.i.l.bf16 %v2420_v60 }
 0x123   :  { %v1089_v45 = vmax.f32 %v1085_v49, %v2603_v56 }
 0x125   :  { %v1093_v62 = vmax.f32 %v1089_v45, %v2606_v9  ;;  %v2056_v45 = vunpack.i.l.bf16 %v2055_v11 }
 0x126   :  { %v993_v1 = vpop.f32.mrf.mxu2  ;;  %v1033_v4 = vpop.f32.mrf.mxu3 }
 0x127   :  { %v1097_v14 = vmax.f32 %v1093_v62, %v2610_v53  ;;  %v915_v55 = vpop.f32.mrf.mxu0  ;;  %v955_v49 = vpop.f32.mrf.mxu1  ;;  %v2621_v54 = vadd.f32 %v2016_v16, %v993_v1  ;;  %v2625_v26 = vadd.f32 %v2056_v45, %v1033_v4 }
 0x128   :  { %v2629_v29 = vadd.f32 %v1937_v57, %v915_v55  ;;  %v2633_v1 = vadd.f32 %v1977_v58, %v955_v49  ;;  %v2060_v49 = vpop.permute.xlu1 %2059 }
 0x129   :  { %v1101_v59 = vmax.f32 %v1097_v14, %v2614_v48  ;;  %3586 = vst [vmem:[#allocation23_spill] sm:$0xff] %v2625_v26 }
 0x12b   :  { %v1054_v34 = vmax.f32 %v2618_v22, %v1101_v59 }
 0x12d   :  { %v1058_v62 = vmax.f32 %v1054_v34, %v2621_v54 }
 0x12e   :  { %v995_v2 = vpop.f32.mrf.mxu2  ;;  %v1035_v47 = vpop.f32.mrf.mxu3 }
 0x12f   :  { %v1062_v14 = vmax.f32 %v1058_v62, %v2625_v26  ;;  %v918_v16 = vpop.f32.mrf.mxu0  ;;  %v2636_v4 = vadd.f32 %v2017_v10, %v995_v2  ;;  %v958_v45 = vpop.f32.mrf.mxu1  ;;  %v2640_v62 = vadd.f32 %v2057_v44, %v1035_v47  ;;  %v1942_v26 = vunpack.i.h.bf16 %v2396_v52 }
 0x130   :  { %v2644_v58 = vadd.f32 %v1941_v51, %v918_v16  ;;  %v2648_v10 = vadd.f32 %v1981_v61, %v958_v45 }
 0x131   :  { %v1066_v59 = vmax.f32 %v1062_v14, %v2629_v29  ;;  %3587 = vst [vmem:[#allocation24_spill] sm:$0xff] %v2636_v4  ;;  %v2021_v14 = vunpack.i.l.bf16 %v2502_v0 }
 0x132   :  { %3588 = vst [vmem:[#allocation25_spill] sm:$0xff] %v2640_v62 }
 0x133   :  { %v1070_v34 = vmax.f32 %v1066_v59, %v2633_v1  ;;  %v2061_v59 = vunpack.i.l.bf16 %v2060_v49 }
 0x135   :  { %v1074_v18 = vmax.f32 %v1070_v34, %v2636_v4 }
 0x136   :  { %v998_v57 = vpop.f32.mrf.mxu2  ;;  %v1038_v11 = vpop.f32.mrf.mxu3 }
 0x137   :  { %v1078_v55 = vmax.f32 %v1074_v18, %v2640_v62  ;;  %v2651_v47 = vadd.f32 %v2021_v14, %v998_v57  ;;  %v920_v44 = vpop.f32.mrf.mxu0  ;;  %v2655_v51 = vadd.f32 %v2061_v59, %v1038_v11  ;;  %v960_v16 = vpop.f32.mrf.mxu1  ;;  %v1982_v62 = vunpack.i.h.bf16 %v2420_v60 }
 0x138   :  { %v2659_v45 = vadd.f32 %v1942_v26, %v920_v44  ;;  %v2062_v11 = vunpack.i.h.bf16 %v2060_v49  ;;  %v2674_v26 = vadd.s32 128, %v2665_v32  ;;  %v2684_v49 = vadd.s32 256, %v2665_v32 }
 0x139   :  { %v1082_v2 = vmax.f32 %v1078_v55, %v2644_v58  ;;  %3589 = vst [vmem:[#allocation26_spill] sm:$0xff] %v2651_v47  ;;  %v2663_v14 = vadd.f32 %v1982_v62, %v960_v16  ;;  %v2680_v62 = vadd.s32 136, %v2665_v32  ;;  %v2687_v44 = vadd.s32 264, %v2665_v32 }
 0x13a   :  { %3590 = vst [vmem:[#allocation27_spill] sm:$0xff] %v2655_v51  ;;  %v2690_v16 = vadd.s32 16, %v2665_v32 }
 0x13b   :  { %v1086_v34 = vmax.f32 %v1082_v2, %v2648_v10  ;;  %v2022_v2 = vunpack.i.h.bf16 %v2502_v0  ;;  %3593 = vst [vmem:[#allocation30_spill] sm:$0xff] %v2674_v26  ;;  %v2677_v0 = vadd.s32 8, %v2665_v32  ;;  %v2759_v26 = vadd.s32 184, %v2665_v32 }
 0x13c   :  { %3594 = vst [vmem:[#allocation31_spill] sm:$0xff] %v2680_v62  ;;  %v2732_v62 = vadd.s32 168, %v2665_v32 }
 0x13d   :  { %v1090_v18 = vmax.f32 %v1086_v34, %v2651_v47  ;;  %3595 = vst [vmem:[#allocation32_spill] sm:$0xff] %v2684_v49 }
 0x13e   :  { %v1000_v61 = vpop.f32.mrf.mxu2  ;;  %v1040_v52 = vpop.f32.mrf.mxu3  ;;  %3596 = vst [vmem:[#allocation33_spill] sm:$0xff] %v2687_v44  ;;  %v2714_v44 = vadd.s32 32, %v2665_v32 }
 0x13f   :  { %v1094_v55 = vmax.f32 %v1090_v18, %v2655_v51  ;;  %v2668_v34 = vadd.f32 %v2022_v2, %v1000_v61  ;;  %v2671_v18 = vadd.f32 %v2062_v11, %v1040_v52  ;;  %v2696_v61 = vadd.s32 384, %v2665_v32  ;;  %3607 = vst [vmem:[#allocation44_spill] sm:$0xff] %v2732_v62 }
 0x140   :  { %v2699_v2 = vadd.s32 392, %v2665_v32  ;;  %v2705_v11 = vadd.s32 152, %v2665_v32  ;;  %v2753_v62 = vadd.s32 432, %v2665_v32  ;;  %3614 = vst [vmem:[#allocation51_spill] sm:$0xff] %v2759_v26  ;;  %v2777_v51 = vadd.s32 448, %v2665_v32 }
 0x141   :  { %v1098_v57 = vmax.f32 %v1094_v55, %v2659_v45  ;;  %3591 = vst [vmem:[#allocation28_spill] sm:$0xff] %v2668_v34  ;;  %v2693_v55 = vadd.s32 144, %v2665_v32  ;;  %v2780_v26 = vadd.s32 72, %v2665_v32 }
 0x142   :  { %3592 = vst [vmem:[#allocation29_spill] sm:$0xff] %v2671_v18 }
 0x143   :  { %v1102_v59 = vmax.f32 %v1098_v57, %v2663_v14  ;;  %3597 = vst [vmem:[#allocation34_spill] sm:$0xff] %v2693_v55  ;;  %v2702_v57 = vadd.s32 24, %v2665_v32  ;;  %v2116_v55 = vmov -inf  }
 0x144   :  { %3598 = vst [vmem:[#allocation35_spill] sm:$0xff] %v2696_v61  ;;  %v2717_v61 = vadd.s32 160, %v2665_v32 }
 0x145   :  { %v1104_v60 = vmax.f32 %v2668_v34, %v1102_v59  ;;  %3599 = vst [vmem:[#allocation36_spill] sm:$0xff] %v2699_v2  ;;  %v2708_v59 = vadd.s32 272, %v2665_v32  ;;  %v2720_v2 = vadd.s32 288, %v2665_v32  ;;  %v3645_v34 = vld [vmem:[#allocation20_spill] sm:$0xff] }
 0x146   :  { %3600 = vst [vmem:[#allocation37_spill] sm:$0xff] %v2705_v11  ;;  %v2723_v11 = vadd.s32 400, %v2665_v32 }
 0x147   :  { %v1105_v33 = vmax.f32 %v2671_v18, %v1104_v60  ;;  %3601 = vst [vmem:[#allocation38_spill] sm:$0xff] %v2708_v59  ;;  %v2711_v60 = vadd.s32 280, %v2665_v32  ;;  %v2726_v59 = vadd.s32 408, %v2665_v32 }
 0x148   :  { %3603 = vst [vmem:[#allocation40_spill] sm:$0xff] %v2717_v61  ;;  %v2735_v61 = vadd.s32 296, %v2665_v32 }
 0x149   :  { %v1106_v52 = vrot.slane %v1105_v33, 4  ;;  %3602 = vst [vmem:[#allocation39_spill] sm:$0xff] %v2711_v60  ;;  %v2729_v60 = vadd.s32 40, %v2665_v32 }
 0x14a   :  { %3604 = vst [vmem:[#allocation41_spill] sm:$0xff] %v2720_v2  ;;  %v2738_v2 = vadd.s32 48, %v2665_v32 }
 0x14b   :  { %v1107_v49 = vmax.f32 %v1105_v33, %v1106_v52  ;;  %22 = vst [vmem:[#allocation2] sm:$0x1] %v2116_v55  ;;  %v2741_v33 = vadd.s32 176, %v2665_v32  ;;  %v2744_v52 = vadd.s32 304, %v2665_v32 }
 0x14c   :  { %3605 = vst [vmem:[#allocation42_spill] sm:$0xff] %v2723_v11  ;;  %v2750_v11 = vadd.s32 424, %v2665_v32 }
 0x14d   :  { %3606 = vst [vmem:[#allocation43_spill] sm:$0xff] %v2726_v59  ;;  %v1108_v55 = vrot.slane %v1107_v49, 2  ;;  %v2747_v59 = vadd.s32 416, %v2665_v32 }
 0x14e   :  { %3608 = vst [vmem:[#allocation45_spill] sm:$0xff] %v2735_v61  ;;  %v2756_v61 = vadd.s32 56, %v2665_v32 }
 0x14f   :  { %3609 = vst [vmem:[#allocation46_spill] sm:$0xff] %v2741_v33  ;;  %v2762_v33 = vadd.s32 312, %v2665_v32  ;;  %v1109_v18 = vmax.f32 %v1107_v49, %v1108_v55  ;;  %v2783_v49 = vadd.s32 200, %v2665_v32 }
 0x150   :  { %3610 = vst [vmem:[#allocation47_spill] sm:$0xff] %v2744_v52  ;;  %v2765_v52 = vadd.s32 440, %v2665_v32 }
 0x151   :  { %3611 = vst [vmem:[#allocation48_spill] sm:$0xff] %v2747_v59  ;;  %v2768_v59 = vadd.s32 64, %v2665_v32  ;;  %v1110_v55 = vrot.slane %v1109_v18, 1 }
 0x152   :  { %3612 = vst [vmem:[#allocation49_spill] sm:$0xff] %v2750_v11  ;;  %v2771_v11 = vadd.s32 192, %v2665_v32 }
 0x153   :  { %3613 = vst [vmem:[#allocation50_spill] sm:$0xff] %v2753_v62  ;;  %v2774_v62 = vadd.s32 320, %v2665_v32 }
 0x154   :  { %3615 = vst [vmem:[#allocation52_spill] sm:$0xff] %v2762_v33  ;;  %v2789_v33 = vadd.s32 456, %v2665_v32 }
 0x155   :  { %3616 = vst [vmem:[#allocation53_spill] sm:$0xff] %v2765_v52  ;;  %v2786_v52 = vadd.s32 328, %v2665_v32 }
 0x156   :  { %3617 = vst [vmem:[#allocation54_spill] sm:$0xff] %v2768_v59  ;;  %v2806_v59 = vmax.f32 %v1109_v18, %v1110_v55  ;;  %v2827_v18 = vadd.s32 480, %v2665_v32  ;;  %v2830_v55 = vadd.s32 104, %v2665_v32 }
 0x157   :  { %3618 = vst [vmem:[#allocation55_spill] sm:$0xff] %v2771_v11  ;;  %v2792_v11 = vadd.s32 80, %v2665_v32 }
 0x158   :  { %3619 = vst [vmem:[#allocation56_spill] sm:$0xff] %v2774_v62  ;;  %v2795_v62 = vadd.s32 208, %v2665_v32  ;;  %vm1177_vm7 = vcmp.eq.f32.partialorder %v2428_v5, %v2806_v59  ;;  %vm1178_vm8 = vcmp.eq.f32.partialorder %v2432_v13, %v2806_v59  ;;  %vm1179_vm9 = vcmp.eq.f32.partialorder %v2454_v35, %v2806_v59  ;;  %v3649_v5 = vld [vmem:[#allocation9_spill] sm:$0xff]  ;;  %v3651_v13 = vld [vmem:[#allocation11_spill] sm:$0xff] }
 0x159   :  { %3620 = vst [vmem:[#allocation57_spill] sm:$0xff] %v2777_v51  ;;  %v2798_v51 = vadd.s32 336, %v2665_v32  ;;  %vm1180_vm10 = vcmp.eq.f32.partialorder %v2470_v3, %v2806_v59  ;;  %vm1181_vm11 = vcmp.eq.f32.partialorder %v2486_v25, %v2806_v59  ;;  %vm1182_vm5 = vcmp.eq.f32.partialorder %v2506_v8, %v2806_v59  ;;  %v3654_v25 = vld [vmem:[#allocation13_spill] sm:$0xff]  ;;  %v3656_v8 = vld [vmem:[#allocation14_spill] sm:$0xff] }
 0x15a   :  { %3621 = vst [vmem:[#allocation58_spill] sm:$0xff] %v2780_v26  ;;  %v2801_v26 = vadd.s32 464, %v2665_v32  ;;  %vm1183_vm12 = vcmp.eq.f32.partialorder %v2518_v23, %v2806_v59  ;;  %vm1184_vm13 = vcmp.eq.f32.partialorder %v2539_v38, %v2806_v59  ;;  %vm1185_vm14 = vcmp.eq.f32.partialorder %v2554_v43, %v2806_v59  ;;  %v3664_v43 = vld [vmem:[#allocation17_spill] sm:$0xff] }
 0x15b   :  { %3622 = vst [vmem:[#allocation59_spill] sm:$0xff] %v2783_v49  ;;  %v2804_v49 = vadd.s32 88, %v2665_v32  ;;  %vm1215_vm0 = vcmp.eq.f32.partialorder %v2525_v40, %v2806_v59  ;;  %vm1216_vm6 = vcmp.eq.f32.partialorder %v2546_v41, %v2806_v59  ;;  %vm1219_vm1 = vcmp.eq.f32.partialorder %v3645_v34, %v2806_v59 }
 0x15c   :  { %3623 = vst [vmem:[#allocation60_spill] sm:$0xff] %v2786_v52  ;;  %v2809_v52 = vadd.s32 216, %v2665_v32  ;;  %v2969_v47 = vsel %vm1177_vm7, %v2665_v32, 512  ;;  %v2975_v53 = vsel %vm1178_vm8, %v2677_v0, 512  ;;  %v2981_v4 = vsel %vm1179_vm9, %v2690_v16, 512  ;;  %v3652_v0 = vld [vmem:[#allocation10_spill] sm:$0xff] }
 0x15d   :  { %3624 = vst [vmem:[#allocation61_spill] sm:$0xff] %v2789_v33  ;;  %v2812_v33 = vadd.s32 344, %v2665_v32  ;;  %vm1225_vm7 = vcmp.eq.f32.partialorder %v3649_v5, %v2806_v59  ;;  %vm1227_vm8 = vcmp.eq.f32.partialorder %v3651_v13, %v2806_v59  ;;  %vm1228_vm4 = vcmp.eq.f32.partialorder %v3652_v0, %v2806_v59  ;;  %v3658_v23 = vld [vmem:[#allocation54_spill] sm:$0xff]  ;;  %v3743_v5 = vld [vmem:[#allocation48_spill] sm:$0xff]  ;;  %v3747_v0 = vld [vmem:[#allocation53_spill] sm:$0xff] }
 0x15e   :  { %3625 = vst [vmem:[#allocation62_spill] sm:$0xff] %v2792_v11  ;;  %v2815_v11 = vadd.s32 472, %v2665_v32  ;;  %v3001_v35 = vsel %vm1181_vm11, %v2714_v44, 512  ;;  %v3007_v3 = vsel %vm1182_vm5, %v2729_v60, 512  ;;  %v3013_v16 = vsel %vm1183_vm12, %v2738_v2, 512  ;;  %v3655_v44 = vld [vmem:[#allocation12_spill] sm:$0xff] }
 0x15f   :  { %3626 = vst [vmem:[#allocation63_spill] sm:$0xff] %v2795_v62  ;;  %v2818_v62 = vadd.s32 96, %v2665_v32  ;;  %vm1229_vm9 = vcmp.eq.f32.partialorder %v3654_v25, %v2806_v59  ;;  %v3657_v60 = vld [vmem:[#allocation15_spill] sm:$0xff]  ;;  %v3033_v2 = vsel %vm1185_vm14, %v3658_v23, 512  ;;  %vm3660_vm12 = vcmp.eq.f32.partialorder %v2569_v28, %v2806_v59  ;;  %v3666_v28 = vld [vmem:[#allocation21_spill] sm:$0xff]  ;;  %v3745_v13 = vld [vmem:[#allocation50_spill] sm:$0xff] }
 0x160   :  { %3627 = vst [vmem:[#allocation64_spill] sm:$0xff] %v2798_v51  ;;  %v2821_v51 = vadd.s32 224, %v2665_v32  ;;  %vm3663_vm11 = vcmp.eq.f32.partialorder %v2599_v21, %v2806_v59  ;;  %v3665_v23 = vld [vmem:[#allocation19_spill] sm:$0xff]  ;;  %vm3669_vm14 = vcmp.eq.f32.partialorder %v2644_v58, %v2806_v59  ;;  %v3750_v25 = vld [vmem:[#allocation57_spill] sm:$0xff] }
 0x161   :  { %3628 = vst [vmem:[#allocation65_spill] sm:$0xff] %v2801_v26  ;;  %v2824_v26 = vadd.s32 352, %v2665_v32  ;;  %v3659_v38 = vld [vmem:[#allocation58_spill] sm:$0xff] }
 0x162   :  { %3629 = vst [vmem:[#allocation66_spill] sm:$0xff] %v2809_v52  ;;  %v2839_v52 = vadd.s32 488, %v2665_v32 }
 0x163   :  { %3630 = vst [vmem:[#allocation67_spill] sm:$0xff] %v2812_v33  ;;  %v2833_v33 = vadd.s32 232, %v2665_v32 }
 0x164   :  { %3631 = vst [vmem:[#allocation68_spill] sm:$0xff] %v2815_v11  ;;  %v2836_v11 = vadd.s32 360, %v2665_v32 }
 0x165   :  { %3632 = vst [vmem:[#allocation69_spill] sm:$0xff] %v2821_v51  ;;  %v2842_v51 = vadd.s32 112, %v2665_v32 }
 0x166   :  { %3633 = vst [vmem:[#allocation70_spill] sm:$0xff] %v2824_v26  ;;  %v2845_v26 = vadd.s32 240, %v2665_v32 }
 0x167   :  { %3634 = vst [vmem:[#allocation71_spill] sm:$0xff] %v2827_v18  ;;  %v2848_v18 = vadd.s32 368, %v2665_v32  ;;  %v3723_v40 = vld [vmem:[#allocation64_spill] sm:$0xff] }
 0x168   :  { %3635 = vst [vmem:[#allocation72_spill] sm:$0xff] %v2833_v33  ;;  %v2875_v33 = vadd.s32 504, %v2665_v32 }
 0x169   :  { %3636 = vst [vmem:[#allocation73_spill] sm:$0xff] %v2836_v11  ;;  %v2869_v11 = vadd.s32 248, %v2665_v32 }
 0x16a   :  { %3637 = vst [vmem:[#allocation74_spill] sm:$0xff] %v2839_v52  ;;  %v2863_v52 = vadd.s32 496, %v2665_v32  ;;  %v3725_v41 = vld [vmem:[#allocation67_spill] sm:$0xff] }
 0x16b   :  { %3638 = vst [vmem:[#allocation75_spill] sm:$0xff] %v2845_v26  ;;  %v2872_v26 = vadd.s32 376, %v2665_v32 }
 0x16c   :  { %3639 = vst [vmem:[#allocation76_spill] sm:$0xff] %v2848_v18  ;;  %v2866_v18 = vadd.s32 120, %v2665_v32  ;;  %v3650_v32 = vld [vmem:[#allocation8_spill] sm:$0xff] }
 0x16d   :  { %3640 = vst [vmem:[#allocation77_spill] sm:$0xff] %v2863_v52  ;;  %v3644_v52 = vld [vmem:[#allocation18_spill] sm:$0xff]  ;;  %vm1226_vm15 = vcmp.eq.f32.partialorder %v3650_v32, %v2806_v59  ;;  %v3744_v32 = vld [vmem:[#allocation49_spill] sm:$0xff] }
 0x16e   :  { %3641 = vst [vmem:[#allocation78_spill] sm:$0xff] %v2872_v26  ;;  %vm1218_vm2 = vcmp.eq.f32.partialorder %v3644_v52, %v2806_v59  ;;  %v2987_v26 = vsel %vm1180_vm10, %v2702_v57, 512  ;;  %v3019_v57 = vsel %vm1184_vm13, %v2756_v61, 512  ;;  %vm1230_vm10 = vcmp.eq.f32.partialorder %v3655_v44, %v2806_v59  ;;  %v3753_v44 = vld [vmem:[#allocation61_spill] sm:$0xff] }
 0x16f   :  { %3642 = vst [vmem:[#allocation79_spill] sm:$0xff] %v2875_v33  ;;  %v3643_v33 = vld [vmem:[#allocation16_spill] sm:$0xff]  ;;  %v3039_v61 = vsel %vm3660_vm12, %v3659_v38, 512  ;;  %vm3662_vm13 = vcmp.eq.f32.partialorder %v2584_v42, %v2806_v59  ;;  %vm3671_vm12 = vcmp.eq.f32.partialorder %v2659_v45, %v2806_v59 }
 0x170   :  { %vm1217_vm3 = vcmp.eq.f32.partialorder %v3643_v33, %v2806_v59  ;;  %3647 = vst [vmem:[#allocation16_spill] sm:$0xff] %v2981_v4  ;;  %v3051_v4 = vsel %vm3663_vm11, %v2804_v49, 512  ;;  %vm3668_vm11 = vcmp.eq.f32.partialorder %v2629_v29, %v2806_v59  ;;  %v3081_v49 = vsel %vm3671_vm12, %v2866_v18, 512  ;;  %v3675_v29 = vld [vmem:[#allocation29_spill] sm:$0xff]  ;;  %v3680_v18 = vld [vmem:[#allocation34_spill] sm:$0xff] }
 0x171   :  { %3648 = vst [vmem:[#allocation18_spill] sm:$0xff] %v2987_v26  ;;  %v3661_v26 = vld [vmem:[#allocation62_spill] sm:$0xff]  ;;  %v3069_v21 = vsel %vm3668_vm11, %v2830_v55, 512  ;;  %vm3679_vm12 = vcmp.eq.f32.partialorder %v2441_v19, %v2806_v59  ;;  %vm3683_vm11 = vcmp.eq.f32.partialorder %v2473_v7, %v2806_v59  ;;  %v3686_v19 = vld [vmem:[#allocation44_spill] sm:$0xff]  ;;  %v3690_v7 = vld [vmem:[#allocation51_spill] sm:$0xff] }
 0x172   :  { %3653 = vst [vmem:[#allocation20_spill] sm:$0xff] %v3019_v57  ;;  %v3045_v57 = vsel %vm3662_vm13, %v3661_v26, 512  ;;  %vm3667_vm13 = vcmp.eq.f32.partialorder %v2614_v48, %v2806_v59  ;;  %v3075_v26 = vsel %vm3669_vm14, %v2842_v51, 512  ;;  %v3673_v48 = vld [vmem:[#allocation25_spill] sm:$0xff]  ;;  %v3676_v55 = vld [vmem:[#allocation30_spill] sm:$0xff]  ;;  %vm3677_vm14 = vcmp.eq.f32.partialorder %v2430_v6, %v2806_v59  ;;  %v3678_v51 = vld [vmem:[#allocation31_spill] sm:$0xff] }
 0x173   :  { %v3063_v42 = vsel %vm3667_vm13, %v2818_v62, 512  ;;  %3670 = vst [vmem:[#allocation9_spill] sm:$0xff] %v3075_v26  ;;  %v3674_v62 = vld [vmem:[#allocation27_spill] sm:$0xff]  ;;  %v3093_v58 = vsel %vm3677_vm14, %v3676_v55, 512  ;;  %v3099_v45 = vsel %vm3679_vm12, %v3678_v51, 512  ;;  %vm3681_vm13 = vcmp.eq.f32.partialorder %v2457_v37, %v2806_v59  ;;  %v3684_v6 = vld [vmem:[#allocation40_spill] sm:$0xff] }
 0x174   :  { %3672 = vst [vmem:[#allocation8_spill] sm:$0xff] %v3081_v49  ;;  %vm1239_vm5 = vcmp.eq.f32.partialorder %v3674_v62, %v2806_v59  ;;  %v3105_v38 = vsel %vm3681_vm13, %v3680_v18, 512  ;;  %v3682_v49 = vld [vmem:[#allocation37_spill] sm:$0xff]  ;;  %vm3685_vm14 = vcmp.eq.f32.partialorder %v2490_v30, %v2806_v59  ;;  %vm3687_vm12 = vcmp.eq.f32.partialorder %v2510_v15, %v2806_v59  ;;  %v3688_v37 = vld [vmem:[#allocation46_spill] sm:$0xff]  ;;  %v3692_v30 = vld [vmem:[#allocation55_spill] sm:$0xff] }
 0x175   :  { %v3111_v26 = vsel %vm3683_vm11, %v3682_v49, 512  ;;  %v3117_v55 = vsel %vm3685_vm14, %v3684_v6, 512  ;;  %v3123_v51 = vsel %vm3687_vm12, %v3686_v19, 512  ;;  %vm3689_vm13 = vcmp.eq.f32.partialorder %v2522_v27, %v2806_v59  ;;  %v3694_v15 = vld [vmem:[#allocation59_spill] sm:$0xff]  ;;  %v3728_v33 = vld [vmem:[#allocation70_spill] sm:$0xff]  ;;  %v3730_v52 = vld [vmem:[#allocation73_spill] sm:$0xff] }
 0x176   :  { %v3129_v18 = vsel %vm3689_vm13, %v3688_v37, 512  ;;  %vm3691_vm11 = vcmp.eq.f32.partialorder %v2543_v39, %v2806_v59  ;;  %vm3693_vm14 = vcmp.eq.f32.partialorder %v2558_v63, %v2806_v59  ;;  %vm3695_vm12 = vcmp.eq.f32.partialorder %v2573_v50, %v2806_v59  ;;  %v3696_v27 = vld [vmem:[#allocation63_spill] sm:$0xff]  ;;  %v3698_v39 = vld [vmem:[#allocation66_spill] sm:$0xff]  ;;  %v3700_v63 = vld [vmem:[#allocation69_spill] sm:$0xff] }
 0x177   :  { %v3135_v49 = vsel %vm3691_vm11, %v3690_v7, 512  ;;  %v3141_v6 = vsel %vm3693_vm14, %v3692_v30, 512  ;;  %v3147_v19 = vsel %vm3695_vm12, %v3694_v15, 512  ;;  %vm3697_vm13 = vcmp.eq.f32.partialorder %v2588_v46, %v2806_v59  ;;  %v3702_v50 = vld [vmem:[#allocation72_spill] sm:$0xff]  ;;  %v3704_v46 = vld [vmem:[#allocation75_spill] sm:$0xff] }
 0x178   :  { %v3153_v37 = vsel %vm3697_vm13, %v3696_v27, 512  ;;  %vm3699_vm11 = vcmp.eq.f32.partialorder %v2603_v56, %v2806_v59  ;;  %vm3701_vm14 = vcmp.eq.f32.partialorder %v2618_v22, %v2806_v59  ;;  %vm3703_vm12 = vcmp.eq.f32.partialorder %v2633_v1, %v2806_v59  ;;  %v3707_v22 = vld [vmem:[#allocation32_spill] sm:$0xff]  ;;  %v3709_v1 = vld [vmem:[#allocation33_spill] sm:$0xff] }
 0x179   :  { %v3159_v7 = vsel %vm3699_vm11, %v3698_v39, 512  ;;  %v3165_v30 = vsel %vm3701_vm14, %v3700_v63, 512  ;;  %v3171_v15 = vsel %vm3703_vm12, %v3702_v50, 512  ;;  %vm3705_vm13 = vcmp.eq.f32.partialorder %v2648_v10, %v2806_v59  ;;  %v3711_v10 = vld [vmem:[#allocation38_spill] sm:$0xff]  ;;  %v3733_v34 = vld [vmem:[#allocation76_spill] sm:$0xff] }
 0x17a   :  { %v3177_v27 = vsel %vm3705_vm13, %v3704_v46, 512  ;;  %vm3706_vm11 = vcmp.eq.f32.partialorder %v2663_v14, %v2806_v59  ;;  %vm3708_vm14 = vcmp.eq.f32.partialorder %v2450_v31, %v2806_v59  ;;  %vm3710_vm12 = vcmp.eq.f32.partialorder %v2444_v24, %v2806_v59  ;;  %v3713_v14 = vld [vmem:[#allocation39_spill] sm:$0xff]  ;;  %v3715_v31 = vld [vmem:[#allocation41_spill] sm:$0xff] }
 0x17b   :  { %v3183_v56 = vsel %vm3706_vm11, %v2869_v11, 512  ;;  %v3189_v39 = vsel %vm3708_vm14, %v3707_v22, 512  ;;  %v3195_v63 = vsel %vm3710_vm12, %v3709_v1, 512  ;;  %vm3712_vm13 = vcmp.eq.f32.partialorder %v2480_v20, %v2806_v59  ;;  %v3717_v24 = vld [vmem:[#allocation45_spill] sm:$0xff]  ;;  %v3719_v20 = vld [vmem:[#allocation47_spill] sm:$0xff] }
 0x17c   :  { %v3201_v50 = vsel %vm3712_vm13, %v3711_v10, 512  ;;  %vm3714_vm11 = vcmp.eq.f32.partialorder %v2476_v12, %v2806_v59  ;;  %vm3716_vm14 = vcmp.eq.f32.partialorder %v2493_v36, %v2806_v59  ;;  %vm3718_vm12 = vcmp.eq.f32.partialorder %v2514_v17, %v2806_v59  ;;  %v3720_v12 = vld [vmem:[#allocation52_spill] sm:$0xff] }
 0x17d   :  { %v3207_v11 = vsel %vm3714_vm11, %v3713_v14, 512  ;;  %v3213_v46 = vsel %vm3716_vm14, %v3715_v31, 512  ;;  %v3219_v22 = vsel %vm3718_vm12, %v3717_v24, 512  ;;  %v3225_v1 = vsel %vm1215_vm0, %v3719_v20, 512  ;;  %v3721_v36 = vld [vmem:[#allocation56_spill] sm:$0xff] }
 0x17e   :  { %v3231_v10 = vsel %vm1216_vm6, %v3720_v12, 512  ;;  %v3237_v14 = vsel %vm1217_vm3, %v3721_v36, 512  ;;  %v3722_v17 = vld [vmem:[#allocation60_spill] sm:$0xff]  ;;  %v3249_v24 = vsel %vm1219_vm1, %v3723_v40, 512  ;;  %vm3726_vm6 = vcmp.eq.f32.partialorder %v2606_v9, %v2806_v59  ;;  %v3734_v40 = vld [vmem:[#allocation26_spill] sm:$0xff] }
 0x17f   :  { %v3243_v31 = vsel %vm1218_vm2, %v3722_v17, 512  ;;  %3724 = vst [vmem:[#allocation11_spill] sm:$0xff] %v3249_v24  ;;  %v3255_v20 = vsel %vm3726_vm6, %v3725_v41, 512  ;;  %vm3729_vm3 = vcmp.eq.f32.partialorder %v2621_v54, %v2806_v59  ;;  %v3731_v36 = vld [vmem:[#allocation24_spill] sm:$0xff]  ;;  %vm3735_vm1 = vcmp.eq.f32.partialorder %v3734_v40, %v2806_v59  ;;  %v3736_v9 = vld [vmem:[#allocation78_spill] sm:$0xff]  ;;  %v3739_v54 = vld [vmem:[#allocation35_spill] sm:$0xff] }
 0x180   :  { %3727 = vst [vmem:[#allocation10_spill] sm:$0xff] %v3255_v20  ;;  %v3261_v12 = vsel %vm3729_vm3, %v3728_v33, 512  ;;  %vm3732_vm2 = vcmp.eq.f32.partialorder %v3731_v36, %v2806_v59  ;;  %v3273_v24 = vsel %vm3735_vm1, %v3733_v34, 512  ;;  %v3737_v41 = vld [vmem:[#allocation28_spill] sm:$0xff]  ;;  %v3285_v33 = vsel %vm1225_vm7, %v3739_v54, 512  ;;  %v3741_v34 = vld [vmem:[#allocation42_spill] sm:$0xff] }
 0x181   :  { %v3267_v17 = vsel %vm3732_vm2, %v3730_v52, 512  ;;  %vm3738_vm0 = vcmp.eq.f32.partialorder %v3737_v41, %v2806_v59  ;;  %v3740_v52 = vld [vmem:[#allocation36_spill] sm:$0xff]  ;;  %v3297_v40 = vsel %vm1227_vm8, %v3741_v34, 512  ;;  %v3309_v54 = vsel %vm1229_vm9, %v3743_v5, 512 }
 0x182   :  { %v3279_v20 = vsel %vm3738_vm0, %v3736_v9, 512  ;;  %v3291_v36 = vsel %vm1226_vm15, %v3740_v52, 512  ;;  %v3742_v9 = vld [vmem:[#allocation43_spill] sm:$0xff]  ;;  %v3315_v52 = vsel %vm1230_vm10, %v3744_v32, 512  ;;  %vm3746_vm15 = vcmp.eq.f32.partialorder %v3656_v8, %v2806_v59  ;;  %v3755_v8 = vld [vmem:[#allocation65_spill] sm:$0xff] }
 0x183   :  { %v3303_v41 = vsel %vm1228_vm4, %v3742_v9, 512  ;;  %v3321_v34 = vsel %vm3746_vm15, %v3745_v13, 512  ;;  %vm3748_vm4 = vcmp.eq.f32.partialorder %v3657_v60, %v2806_v59  ;;  %vm3751_vm7 = vcmp.eq.f32.partialorder %v3664_v43, %v2806_v59  ;;  %v3757_v60 = vld [vmem:[#allocation68_spill] sm:$0xff]  ;;  %v3760_v43 = vld [vmem:[#allocation71_spill] sm:$0xff] }
 0x184   :  { %v3327_v9 = vsel %vm3748_vm4, %v3747_v0, 512  ;;  %v3333_v5 = vsel %vm3751_vm7, %v3750_v25, 512  ;;  %vm3754_vm8 = vcmp.eq.f32.partialorder %v3665_v23, %v2806_v59  ;;  %vm3756_vm9 = vcmp.eq.f32.partialorder %v3666_v28, %v2806_v59  ;;  %v3758_v0 = vld [vmem:[#allocation22_spill] sm:$0xff]  ;;  %v3761_v25 = vld [vmem:[#allocation23_spill] sm:$0xff]  ;;  %v3765_v28 = vld [vmem:[#allocation77_spill] sm:$0xff] }
 0x185   :  { %3749 = vst [vmem:[#allocation13_spill] sm:$0xff] %v3327_v9  ;;  %v3339_v32 = vsel %vm3754_vm8, %v3753_v44, 512  ;;  %v3345_v13 = vsel %vm3756_vm9, %v3755_v8, 512  ;;  %vm3759_vm10 = vcmp.eq.f32.partialorder %v3758_v0, %v2806_v59  ;;  %vm3762_vm13 = vcmp.eq.f32.partialorder %v3761_v25, %v2806_v59  ;;  %v3763_v23 = vld [vmem:[#allocation74_spill] sm:$0xff] }
 0x186   :  { %3752 = vst [vmem:[#allocation12_spill] sm:$0xff] %v3333_v5  ;;  %v3351_v9 = vsel %vm3759_vm10, %v3757_v60, 512  ;;  %v3357_v5 = vsel %vm3762_vm13, %v3760_v43, 512  ;;  %vm3764_vm11 = vcmp.eq.f32.partialorder %v3673_v48, %v2806_v59  ;;  %v3369_v8 = vsel %vm1239_vm5, %v3765_v28, 512  ;;  %v3766_v60 = vld [vmem:[#allocation79_spill] sm:$0xff]  ;;  %v3768_v48 = vld [vmem:[#allocation16_spill] sm:$0xff] }
 0x187   :  { %v3363_v44 = vsel %vm3764_vm11, %v3763_v23, 512  ;;  %vm3767_vm14 = vcmp.eq.f32.partialorder %v3675_v29, %v2806_v59  ;;  %vm1305_vm12 = vcmp.lt.s32.totalorder %v2969_v47, %v3001_v35  ;;  %vm1307_vm6 = vcmp.lt.s32.totalorder %v2975_v53, %v3007_v3  ;;  %v3769_v43 = vld [vmem:[#allocation20_spill] sm:$0xff]  ;;  %v3770_v25 = vld [vmem:[#allocation18_spill] sm:$0xff] }
 0x188   :  { %v3375_v0 = vsel %vm3767_vm14, %v3766_v60, 512  ;;  %vm1309_vm3 = vcmp.lt.s32.totalorder %v3768_v48, %v3013_v16  ;;  %vm1311_vm2 = vcmp.lt.s32.totalorder %v3770_v25, %v3769_v43  ;;  %v1306_v62 = vsel %vm1305_vm12, %v2969_v47, %v3001_v35 }
 0x189   :  { %v1308_v29 = vsel %vm1307_vm6, %v2975_v53, %v3007_v3  ;;  %v1310_v23 = vsel %vm1309_vm3, %v3768_v48, %v3013_v16  ;;  %v1312_v28 = vsel %vm1311_vm2, %v3770_v25, %v3769_v43  ;;  %vm1313_vm5 = vcmp.lt.s32.totalorder %v1306_v62, %v3033_v2  ;;  %v3771_v3 = vld [vmem:[#allocation9_spill] sm:$0xff]  ;;  %v3772_v16 = vld [vmem:[#allocation8_spill] sm:$0xff] }
 0x18a   :  { %vm1315_vm1 = vcmp.lt.s32.totalorder %v1308_v29, %v3039_v61  ;;  %vm1317_vm0 = vcmp.lt.s32.totalorder %v1310_v23, %v3045_v57  ;;  %vm1319_vm15 = vcmp.lt.s32.totalorder %v1312_v28, %v3051_v4  ;;  %v1314_v60 = vsel %vm1313_vm5, %v1306_v62, %v3033_v2 }
 0x18b   :  { %v1316_v47 = vsel %vm1315_vm1, %v1308_v29, %v3039_v61  ;;  %v1318_v53 = vsel %vm1317_vm0, %v1310_v23, %v3045_v57  ;;  %v1320_v35 = vsel %vm1319_vm15, %v1312_v28, %v3051_v4  ;;  %vm1321_vm4 = vcmp.lt.s32.totalorder %v1314_v60, %v3063_v42 }
 0x18c   :  { %vm1323_vm7 = vcmp.lt.s32.totalorder %v1316_v47, %v3069_v21  ;;  %vm1325_vm8 = vcmp.lt.s32.totalorder %v1318_v53, %v3771_v3  ;;  %vm1327_vm9 = vcmp.lt.s32.totalorder %v1320_v35, %v3772_v16  ;;  %v1322_v48 = vsel %vm1321_vm4, %v1314_v60, %v3063_v42 }
 0x18d   :  { %v1324_v43 = vsel %vm1323_vm7, %v1316_v47, %v3069_v21  ;;  %v1326_v2 = vsel %vm1325_vm8, %v1318_v53, %v3771_v3  ;;  %v1328_v61 = vsel %vm1327_vm9, %v1320_v35, %v3772_v16  ;;  %vm1329_vm10 = vcmp.lt.s32.totalorder %v1322_v48, %v3093_v58  ;;  %v3776_v53 = vld [vmem:[#allocation12_spill] sm:$0xff]  ;;  %v1442_v35 = vld [vmem:[#allocation2] sm:$0x1] }
 0x18e   :  { %vm1331_vm13 = vcmp.lt.s32.totalorder %v1324_v43, %v3099_v45  ;;  %vm1333_vm11 = vcmp.lt.s32.totalorder %v1326_v2, %v3105_v38  ;;  %vm1335_vm14 = vcmp.lt.s32.totalorder %v1328_v61, %v3111_v26  ;;  %v1330_v4 = vsel %vm1329_vm10, %v1322_v48, %v3093_v58 }
 0x18f   :  { %v1332_v57 = vsel %vm1331_vm13, %v1324_v43, %v3099_v45  ;;  %v1334_v42 = vsel %vm1333_vm11, %v1326_v2, %v3105_v38  ;;  %v1336_v21 = vsel %vm1335_vm14, %v1328_v61, %v3111_v26  ;;  %vm1337_vm12 = vcmp.lt.s32.totalorder %v1330_v4, %v3117_v55  ;;  %v1443_v61 = vld [vmem:[#allocation4] sm:$0x1] }
 0x190   :  { %vm1339_vm6 = vcmp.lt.s32.totalorder %v1332_v57, %v3123_v51  ;;  %vm1341_vm3 = vcmp.lt.s32.totalorder %v1334_v42, %v3129_v18  ;;  %vm1343_vm2 = vcmp.lt.s32.totalorder %v1336_v21, %v3135_v49  ;;  %v1338_v25 = vsel %vm1337_vm12, %v1330_v4, %v3117_v55 }
 0x191   :  { %v1340_v62 = vsel %vm1339_vm6, %v1332_v57, %v3123_v51  ;;  %v1342_v58 = vsel %vm1341_vm3, %v1334_v42, %v3129_v18  ;;  %v1344_v45 = vsel %vm1343_vm2, %v1336_v21, %v3135_v49  ;;  %vm1345_vm5 = vcmp.lt.s32.totalorder %v1338_v25, %v3141_v6 }
 0x192   :  { %vm1347_vm1 = vcmp.lt.s32.totalorder %v1340_v62, %v3147_v19  ;;  %vm1349_vm0 = vcmp.lt.s32.totalorder %v1342_v58, %v3153_v37  ;;  %vm1351_vm15 = vcmp.lt.s32.totalorder %v1344_v45, %v3159_v7  ;;  %v1346_v26 = vsel %vm1345_vm5, %v1338_v25, %v3141_v6 }
 0x193   :  { %v1348_v38 = vsel %vm1347_vm1, %v1340_v62, %v3147_v19  ;;  %v1350_v55 = vsel %vm1349_vm0, %v1342_v58, %v3153_v37  ;;  %v1352_v51 = vsel %vm1351_vm15, %v1344_v45, %v3159_v7  ;;  %vm1353_vm4 = vcmp.lt.s32.totalorder %v1346_v26, %v3165_v30 }
 0x194   :  { %vm1355_vm7 = vcmp.lt.s32.totalorder %v1348_v38, %v3171_v15  ;;  %vm1357_vm8 = vcmp.lt.s32.totalorder %v1350_v55, %v3177_v27  ;;  %vm1359_vm9 = vcmp.lt.s32.totalorder %v1352_v51, %v3183_v56  ;;  %v1354_v18 = vsel %vm1353_vm4, %v1346_v26, %v3165_v30 }
 0x195   :  { %v1356_v49 = vsel %vm1355_vm7, %v1348_v38, %v3171_v15  ;;  %v1358_v6 = vsel %vm1357_vm8, %v1350_v55, %v3177_v27  ;;  %v1360_v19 = vsel %vm1359_vm9, %v1352_v51, %v3183_v56  ;;  %vm1361_vm10 = vcmp.lt.s32.totalorder %v1354_v18, %v3189_v39 }
 0x196   :  { %vm1363_vm13 = vcmp.lt.s32.totalorder %v1356_v49, %v3195_v63  ;;  %vm1365_vm11 = vcmp.lt.s32.totalorder %v1358_v6, %v3201_v50  ;;  %vm1367_vm14 = vcmp.lt.s32.totalorder %v1360_v19, %v3207_v11  ;;  %v1362_v37 = vsel %vm1361_vm10, %v1354_v18, %v3189_v39 }
 0x197   :  { %v1364_v7 = vsel %vm1363_vm13, %v1356_v49, %v3195_v63  ;;  %v1366_v30 = vsel %vm1365_vm11, %v1358_v6, %v3201_v50  ;;  %v1368_v15 = vsel %vm1367_vm14, %v1360_v19, %v3207_v11  ;;  %vm1369_vm12 = vcmp.lt.s32.totalorder %v1362_v37, %v3213_v46  ;;  %v3773_v50 = vld [vmem:[#allocation11_spill] sm:$0xff]  ;;  %v3774_v11 = vld [vmem:[#allocation10_spill] sm:$0xff] }
 0x198   :  { %vm1371_vm6 = vcmp.lt.s32.totalorder %v1364_v7, %v3219_v22  ;;  %vm1373_vm3 = vcmp.lt.s32.totalorder %v1366_v30, %v3225_v1  ;;  %vm1375_vm2 = vcmp.lt.s32.totalorder %v1368_v15, %v3231_v10  ;;  %v1370_v27 = vsel %vm1369_vm12, %v1362_v37, %v3213_v46 }
 0x199   :  { %v1372_v56 = vsel %vm1371_vm6, %v1364_v7, %v3219_v22  ;;  %v1374_v39 = vsel %vm1373_vm3, %v1366_v30, %v3225_v1  ;;  %v1376_v63 = vsel %vm1375_vm2, %v1368_v15, %v3231_v10  ;;  %vm1377_vm5 = vcmp.lt.s32.totalorder %v1370_v27, %v3237_v14 }
 0x19a   :  { %vm1379_vm1 = vcmp.lt.s32.totalorder %v1372_v56, %v3243_v31  ;;  %vm1381_vm0 = vcmp.lt.s32.totalorder %v1374_v39, %v3773_v50  ;;  %vm1383_vm15 = vcmp.lt.s32.totalorder %v1376_v63, %v3774_v11  ;;  %v1378_v29 = vsel %vm1377_vm5, %v1370_v27, %v3237_v14 }
 0x19b   :  { %v1380_v23 = vsel %vm1379_vm1, %v1372_v56, %v3243_v31  ;;  %v1382_v46 = vsel %vm1381_vm0, %v1374_v39, %v3773_v50  ;;  %v1384_v22 = vsel %vm1383_vm15, %v1376_v63, %v3774_v11  ;;  %vm1385_vm4 = vcmp.lt.s32.totalorder %v1378_v29, %v3261_v12 }
 0x19c   :  { %vm1387_vm7 = vcmp.lt.s32.totalorder %v1380_v23, %v3267_v17  ;;  %vm1389_vm8 = vcmp.lt.s32.totalorder %v1382_v46, %v3273_v24  ;;  %vm1391_vm9 = vcmp.lt.s32.totalorder %v1384_v22, %v3279_v20  ;;  %v1386_v1 = vsel %vm1385_vm4, %v1378_v29, %v3261_v12 }
 0x19d   :  { %v1388_v10 = vsel %vm1387_vm7, %v1380_v23, %v3267_v17  ;;  %v1390_v14 = vsel %vm1389_vm8, %v1382_v46, %v3273_v24  ;;  %v1392_v31 = vsel %vm1391_vm9, %v1384_v22, %v3279_v20  ;;  %vm1393_vm10 = vcmp.lt.s32.totalorder %v1386_v1, %v3285_v33  ;;  %v3775_v24 = vld [vmem:[#allocation13_spill] sm:$0xff] }
 0x19e   :  { %vm1395_vm13 = vcmp.lt.s32.totalorder %v1388_v10, %v3291_v36  ;;  %vm1397_vm11 = vcmp.lt.s32.totalorder %v1390_v14, %v3297_v40  ;;  %vm1399_vm14 = vcmp.lt.s32.totalorder %v1392_v31, %v3303_v41  ;;  %v1394_v28 = vsel %vm1393_vm10, %v1386_v1, %v3285_v33 }
 0x19f   :  { %v1396_v60 = vsel %vm1395_vm13, %v1388_v10, %v3291_v36  ;;  %v1398_v12 = vsel %vm1397_vm11, %v1390_v14, %v3297_v40  ;;  %v1400_v17 = vsel %vm1399_vm14, %v1392_v31, %v3303_v41  ;;  %vm1401_vm12 = vcmp.lt.s32.totalorder %v1394_v28, %v3309_v54 }
 0x1a0   :  { %vm1403_vm6 = vcmp.lt.s32.totalorder %v1396_v60, %v3315_v52  ;;  %vm1405_vm3 = vcmp.lt.s32.totalorder %v1398_v12, %v3321_v34  ;;  %vm1407_vm2 = vcmp.lt.s32.totalorder %v1400_v17, %v3775_v24  ;;  %v1402_v20 = vsel %vm1401_vm12, %v1394_v28, %v3309_v54 }
 0x1a1   :  { %v1404_v47 = vsel %vm1403_vm6, %v1396_v60, %v3315_v52  ;;  %v1406_v33 = vsel %vm1405_vm3, %v1398_v12, %v3321_v34  ;;  %v1408_v36 = vsel %vm1407_vm2, %v1400_v17, %v3775_v24  ;;  %vm1409_vm5 = vcmp.lt.s32.totalorder %v1402_v20, %v3776_v53 }
 0x1a2   :  { %vm1411_vm1 = vcmp.lt.s32.totalorder %v1404_v47, %v3339_v32  ;;  %vm1413_vm0 = vcmp.lt.s32.totalorder %v1406_v33, %v3345_v13  ;;  %vm1415_vm15 = vcmp.lt.s32.totalorder %v1408_v36, %v3351_v9  ;;  %v1410_v40 = vsel %vm1409_vm5, %v1402_v20, %v3776_v53 }
 0x1a3   :  { %v1412_v41 = vsel %vm1411_vm1, %v1404_v47, %v3339_v32  ;;  %v1414_v54 = vsel %vm1413_vm0, %v1406_v33, %v3345_v13  ;;  %v1416_v52 = vsel %vm1415_vm15, %v1408_v36, %v3351_v9  ;;  %vm1417_vm4 = vcmp.lt.s32.totalorder %v1410_v40, %v3357_v5 }
 0x1a4   :  { %vm1419_vm7 = vcmp.lt.s32.totalorder %v1412_v41, %v3363_v44  ;;  %vm1421_vm8 = vcmp.lt.s32.totalorder %v1414_v54, %v3369_v8  ;;  %vm1423_vm9 = vcmp.lt.s32.totalorder %v1416_v52, %v3375_v0  ;;  %v1418_v34 = vsel %vm1417_vm4, %v1410_v40, %v3357_v5 }
 0x1a5   :  { %v1420_v32 = vsel %vm1419_vm7, %v1412_v41, %v3363_v44  ;;  %v1422_v9 = vsel %vm1421_vm8, %v1414_v54, %v3369_v8  ;;  %v1424_v13 = vsel %vm1423_vm9, %v1416_v52, %v3375_v0  ;;  %vm1444_vm11 = vcmp.gt.f32.partialorder %v2806_v59, %v1442_v35 }
 0x1a6   :  { %vm1425_vm10 = vcmp.lt.s32.totalorder %v1418_v34, %v1420_v32  ;;  %vm1427_vm13 = vcmp.lt.s32.totalorder %v1422_v9, %v1424_v13  ;;  %v1445_v48 = vsel %vm1444_vm11, %v2806_v59, %v1442_v35 }
 0x1a7   :  { %v1426_v3 = vsel %vm1425_vm10, %v1418_v34, %v1420_v32  ;;  %v1428_v16 = vsel %vm1427_vm13, %v1422_v9, %v1424_v13  ;;  %1446 = vst [vmem:[#allocation2] sm:$0x1] %v1445_v48 }
 0x1a8   :  { %vm1429_vm14 = vcmp.lt.s32.totalorder %v1426_v3, %v1428_v16  ;;  %1459 = dma.vmem_to_hbm [thread:$0]  %s1455_s24, 16, %s1457_s26, [#allocation3]  }
 0x1a9   :  { %v1430_v5 = vsel %vm1429_vm14, %v1426_v3, %v1428_v16 }
 0x1aa   :  { %v1431_v44 = vrot.slane %v1430_v5, 4 }
 0x1ac   :  { %vm1432_vm12 = vcmp.lt.s32.totalorder %v1430_v5, %v1431_v44 }
 0x1ad   :  { %v1433_v8 = vsel %vm1432_vm12, %v1430_v5, %v1431_v44 }
 0x1ae   :  { %v1434_v0 = vrot.slane %v1433_v8, 2 }
 0x1b0   :  { %vm1435_vm6 = vcmp.lt.s32.totalorder %v1433_v8, %v1434_v0 }
 0x1b1   :  { %v1436_v43 = vsel %vm1435_vm6, %v1433_v8, %v1434_v0 }
 0x1b2   :  { %v1437_v2 = vrot.slane %v1436_v43, 1 }
 0x1b4   :  { %vm1438_vm3 = vcmp.lt.s32.totalorder %v1436_v43, %v1437_v2 }
 0x1b5   :  { %v1439_v4 = vsel %vm1438_vm3, %v1436_v43, %v1437_v2 }
 0x1b6   :  { %v1447_v57 = vsel %vm1444_vm11, %v1439_v4, %v1443_v61 }
 0x1b7   :  { %1448 = vst [vmem:[#allocation4] sm:$0x1] %v1447_v57 }
 0x1b8   :  { %1470 = dma.vmem_to_hbm [thread:$0]  %s1466_s27, 16, %s1468_s30, [#allocation5]  }
 0x1b9   :  { %2111 = dma.done.wait [#allocation3], 16  }
 0x1ba   :  { %2112 = vsyncadd [#allocation3], 4294967280 }
 0x1bb   :  { %2113 = dma.done.wait [#allocation5], 16  }
 0x1bc   :  { %2114 = vsyncadd [#allocation5], 4294967280 }
 0x1bd   :  { %1479 = vsyncpa [#allocation3], 1 }
 0x1be   :  { %1480 = vsyncpa [#allocation5], 1 }

</bundles_post_ra>
